<compile_context>
chip_gen: v6e
topology: v6e:2x2x1
jax: 0.10.0
libtpu: 0.0.40
codegen_flags: <defaults>
</compile_context>

<pallas_src>
import math
from functools import partial

import jax
import jax.numpy as jnp
from jax import lax
from jax.experimental import pallas as pl
from jax.experimental.pallas import tpu as pltpu

# ----------------------------- config (small) --------------------------------
D = 32                    # d_model for both stages (=> pad_dimension is None)
NUM_HEADS = 4
D_HEAD = D // NUM_HEADS   # 8
ROT_DIM = D_HEAD          # rotary_emb_dim (full-head NeoX rotary)
D_MLP = 64                # d_intermediate (SwiGLU hidden)
RMS_EPS = 1e-5
N_COMPRESS_RATIO = 3.0    # N_compress[stage+1] / N_compress[stage]
ROPE_BASE = 10000.0
ROPE_MSL = 2048
N_ENC_LAYERS, N_MAIN_LAYERS, N_DEC_LAYERS = 1, 2, 1   # arch_layout ~ ["T1",["T2"],"T1"]
NEG_INF = -1e30
VMEM_LIMIT = 32 * 1024 * 1024


def _cparams(*sem):
    return pltpu.CompilerParams(dimension_semantics=sem, vmem_limit_bytes=VMEM_LIMIT)


def _pad_tile(n):
    """(n_pad, tile): token tile size, multiple of 8, capped at 128."""
    n8 = max(8, ((n + 7) // 8) * 8)
    if n8 <= 128:
        return n8, n8
    tile = 128
    return ((n + tile - 1) // tile) * tile, tile


# ------------------------------ Pallas kernels --------------------------------
def _qkv_kernel(x_ref, res_ref, cos_ref, sin_ref, n1_ref,
                wq_ref, wqr_ref, wk_ref, wkr_ref, wv_ref,
                q_ref, k_ref, v_ref, rout_ref, *, eps):
    """Token-tiled: residual add + RMSNorm1 + QKV proj + NeoX rope.

    Rope rotation and softmax scale are folded into (wq, wq_rot)/(wk, wk_rot),
    so rope is just two extra independent matmuls + a fused multiply-add."""
    residual = x_ref[...] + res_ref[...]                      # f32 residual stream
    ms = jnp.mean(residual * residual, axis=-1, keepdims=True)
    xn = residual * lax.rsqrt(ms + eps) * n1_ref[...]
    xb = xn.astype(jnp.bfloat16)

    cos = cos_ref[...]
    sin = sin_ref[...]
    q = jnp.dot(xb, wq_ref[...], preferred_element_type=jnp.float32)
    qr = jnp.dot(xb, wqr_ref[...], preferred_element_type=jnp.float32)
    k = jnp.dot(xb, wk_ref[...], preferred_element_type=jnp.float32)
    kr = jnp.dot(xb, wkr_ref[...], preferred_element_type=jnp.float32)

    q_ref[...] = (q * cos + qr * sin).astype(jnp.bfloat16)
    k_ref[...] = (k * cos + kr * sin).astype(jnp.bfloat16)
    v_ref[...] = jnp.dot(xb, wv_ref[...],
                         preferred_element_type=jnp.float32).astype(jnp.bfloat16)
    rout_ref[...] = residual


def _flash_mlp_kernel(q_ref, k_ref, v_ref, res_ref, segq_ref, segk_ref,
                      wo_ref, n2_ref, nf_ref, w1_ref, wg_ref, w2_ref,
                      xo_ref, ro_ref,
                      m_sc, l_sc, acc_sc, *, eps, final_norm, tile):
    """Flash-style varlen-causal attention + fused block epilogue.

    grid = (q_tiles, kv_tiles); kv is the reduction ("arbitrary") axis.
    The last kv step normalizes, folds the head concat into the out_proj
    accumulation, and runs residual+RMSNorm2+SwiGLU+fc2 (+final norm)."""
    qi = pl.program_id(0)
    kj = pl.program_id(1)

    @pl.when(kj == 0)
    def _():
        m_sc[...] = jnp.full_like(m_sc, NEG_INF)
        l_sc[...] = jnp.zeros_like(l_sc)
        acc_sc[...] = jnp.zeros_like(acc_sc)

    # Skip kv tiles fully above the causal diagonal (q tile == kv tile size).
    @pl.when(kj <= qi)
    def _():
        q = q_ref[...]                                        # (tile, D) bf16
        k = k_ref[...]
        v = v_ref[...]
        row = lax.broadcasted_iota(jnp.int32, (tile, tile), 0) + qi * tile
        col = lax.broadcasted_iota(jnp.int32, (tile, tile), 1) + kj * tile
        mask = (col <= row) & (segq_ref[...] == segk_ref[...])

        m_prev = m_sc[...]
        l_prev = l_sc[...]
        acc_prev = acc_sc[...]
        m_cols, l_cols, acc_cols = [], [], []
        for h in range(NUM_HEADS):
            sl = slice(h * D_HEAD, (h + 1) * D_HEAD)
            # softmax scale already folded into Wq
            s = lax.dot_general(q[:, sl], k[:, sl], (((1,), (1,)), ((), ())),
                                preferred_element_type=jnp.float32)
            s = jnp.where(mask, s, NEG_INF)                   # mask in f32
            m_p = m_prev[:, h:h + 1]
            m_h = jnp.maximum(m_p, jnp.max(s, axis=-1, keepdims=True))
            alpha = jnp.exp(m_p - m_h)
            p = jnp.exp(s - m_h)
            l_cols.append(alpha * l_prev[:, h:h + 1]
                          + jnp.sum(p, axis=-1, keepdims=True))
            acc_cols.append(alpha * acc_prev[:, sl]
                            + jnp.dot(p.astype(jnp.bfloat16), v[:, sl],
                                      preferred_element_type=jnp.float32))
            m_cols.append(m_h)
        m_sc[...] = jnp.concatenate(m_cols, axis=-1)
        l_sc[...] = jnp.concatenate(l_cols, axis=-1)
        acc_sc[...] = jnp.concatenate(acc_cols, axis=-1)

    @pl.when(kj == pl.num_programs(1) - 1)
    def _():
        l = jnp.maximum(l_sc[...], 1e-30)
        acc = acc_sc[...]
        wo = wo_ref[...]
        attn = jnp.zeros((tile, D), jnp.float32)
        for h in range(NUM_HEADS):
            sl = slice(h * D_HEAD, (h + 1) * D_HEAD)
            o_h = (acc[:, sl] / l[:, h:h + 1]).astype(jnp.bfloat16)   # exact div
            attn = attn + jnp.dot(o_h, wo[sl, :],
                                  preferred_element_type=jnp.float32)

        residual = attn + res_ref[...]
        ms2 = jnp.mean(residual * residual, axis=-1, keepdims=True)
        xn2 = residual * lax.rsqrt(ms2 + eps) * n2_ref[...]
        xb2 = xn2.astype(jnp.bfloat16)
        hlin = jnp.dot(xb2, w1_ref[...], preferred_element_type=jnp.float32)
        g = jnp.dot(xb2, wg_ref[...], preferred_element_type=jnp.float32)
        gated = hlin * g * lax.logistic(g)                    # h * silu(g)
        mlp = jnp.dot(gated.astype(jnp.bfloat16), w2_ref[...],
                      preferred_element_type=jnp.float32)
        if final_norm:                                        # fused Isotropic final norm
            y = mlp + residual
            msf = jnp.mean(y * y, axis=-1, keepdims=True)
            xo_ref[...] = y * lax.rsqrt(msf + eps) * nf_ref[...]
        else:
            xo_ref[...] = mlp
        ro_ref[...] = residual


def _routing_kernel(r_ref, rprev_ref, start_ref, wq_ref, wk_ref, p_ref):
    """RoutingModule: k/q projections, q[start] = -k, cosine-sim -> p."""
    r = r_ref[...]
    k = jnp.dot(r, wk_ref[...], preferred_element_type=jnp.float32)
    qp = jnp.dot(rprev_ref[...], wq_ref[...], preferred_element_type=jnp.float32)
    q = jnp.where(start_ref[...] > 0.5, -k, qp)
    qn = jnp.maximum(jnp.sqrt(jnp.sum(q * q, axis=-1, keepdims=True)), 1e-8)
    kn = jnp.maximum(jnp.sqrt(jnp.sum(k * k, axis=-1, keepdims=True)), 1e-8)
    cos = jnp.sum(q * k, axis=-1, keepdims=True) / (qn * kn)
    p_ref[...] = jnp.clip(0.5 - 0.5 * cos, 0.0, 1.0)


def _dechunk_kernel(x_ref, prow_ref, scol_ref, segc_ref, srow_ref, segr_ref,
                    o_ref, *, tile):
    """DeChunk EMA h_t=(1-p_t)h_{t-1}+p_t x_t (per-sequence reset) as a
    row-tiled masked decay-matrix matmul: W[t,s]=p_s*exp(S[t]-S[s]) with the
    per-sequence inclusive cumsum S of log(1-p) precomputed in the wrapper."""
    i = pl.program_id(0)
    m = prow_ref.shape[1]
    row = lax.broadcasted_iota(jnp.int32, (tile, m), 0) + i * tile
    col = lax.broadcasted_iota(jnp.int32, (tile, m), 1)
    mask = (col <= row) & (segr_ref[...] == segc_ref[...])
    expo = jnp.minimum(srow_ref[...] - scol_ref[...], 0.0)
    w = jnp.where(mask, jnp.exp(expo) * prow_ref[...], 0.0)
    o_ref[...] = jnp.dot(w, x_ref[...], preferred_element_type=jnp.float32)


def _merge_kernel(r_ref, z_ref, w_ref, b_ref, o_ref):
    """HighPrecLinear residual_proj(r) + z * ste(c)  (ste(c)==1 in forward)."""
    o_ref[...] = (jnp.dot(r_ref[...], w_ref[...], preferred_element_type=jnp.float32)
                  + b_ref[...] + z_ref[...])


# ------------------------------ kernel wrappers --------------------------------
def qkv_pallas(x, res, cos, sin, lp, tile):
    n_pad = x.shape[0]
    tok_spec = pl.BlockSpec((tile, D), lambda i: (i, 0))

    def w_spec(shape):
        return pl.BlockSpec(shape, lambda i: (0, 0))

    return pl.pallas_call(
        partial(_qkv_kernel, eps=RMS_EPS),
        grid=(n_pad // tile,),
        in_specs=[tok_spec, tok_spec, tok_spec, tok_spec,
                  w_spec((1, D)),
                  w_spec((D, D)), w_spec((D, D)), w_spec((D, D)),
                  w_spec((D, D)), w_spec((D, D))],
        out_specs=(tok_spec, tok_spec, tok_spec, tok_spec),
        out_shape=(jax.ShapeDtypeStruct((n_pad, D), jnp.bfloat16),
                   jax.ShapeDtypeStruct((n_pad, D), jnp.bfloat16),
                   jax.ShapeDtypeStruct((n_pad, D), jnp.bfloat16),
                   jax.ShapeDtypeStruct((n_pad, D), jnp.float32)),
        compiler_params=_cparams("parallel"),
    )(x, res, cos, sin, lp["norm1"],
      lp["wq_t"], lp["wq_rot_t"], lp["wk_t"], lp["wk_rot_t"], lp["wv_t"])


def flash_block_pallas(q, k, v, residual, seg_row, seg_col, lp, norm_f,
                       final_norm, tile):
    n_pad = q.shape[0]
    nt = n_pad // tile
    q_spec = pl.BlockSpec((tile, D), lambda i, j: (i, 0))
    kv_spec = pl.BlockSpec((tile, D), lambda i, j: (j, 0))
    segq_spec = pl.BlockSpec((tile, 1), lambda i, j: (i, 0))
    segk_spec = pl.BlockSpec((1, tile), lambda i, j: (0, j))
    out_spec = pl.BlockSpec((tile, D), lambda i, j: (i, 0))

    def w_spec(shape):
        return pl.BlockSpec(shape, lambda i, j: (0, 0))

    flops = (4 * n_pad * n_pad * D                       # QK^T + PV
             + 2 * n_pad * D * D                         # out_proj
             + 2 * n_pad * D * 2 * D_MLP + 2 * n_pad * D_MLP * D)  # SwiGLU
    cost = pl.CostEstimate(
        flops=flops,
        transcendentals=NUM_HEADS * n_pad * n_pad + n_pad * D_MLP,
        bytes_accessed=3 * n_pad * D * 2 + 4 * n_pad * D * 4)

    return pl.pallas_call(
        partial(_flash_mlp_kernel, eps=RMS_EPS, final_norm=final_norm, tile=tile),
        grid=(nt, nt),
        in_specs=[q_spec, kv_spec, kv_spec, q_spec, segq_spec, segk_spec,
                  w_spec((D, D)), w_spec((1, D)), w_spec((1, D)),
                  w_spec((D, D_MLP)), w_spec((D, D_MLP)), w_spec((D_MLP, D))],
        out_specs=(out_spec, out_spec),
        out_shape=(jax.ShapeDtypeStruct((n_pad, D), jnp.float32),
                   jax.ShapeDtypeStruct((n_pad, D), jnp.float32)),
        scratch_shapes=[pltpu.VMEM((tile, NUM_HEADS), jnp.float32),
                        pltpu.VMEM((tile, NUM_HEADS), jnp.float32),
                        pltpu.VMEM((tile, D), jnp.float32)],
        compiler_params=_cparams("parallel", "arbitrary"),
        cost_estimate=cost,
    )(q, k, v, residual, seg_row, seg_col,
      lp["wo_t"], lp["norm2"], norm_f, lp["w1_t"], lp["wg_t"], lp["w2_t"])


# ------------------------------ model glue ------------------------------------
def rope_cache(base, dim, msl):
    inv = 1.0 / (base ** (jnp.arange(0, dim, 2, dtype=jnp.float32) / dim))
    t = jnp.arange(msl, dtype=jnp.float32)
    freqs = jnp.outer(t, inv)
    return jnp.cos(freqs), jnp.sin(freqs)


def _rope_tables(pos, cos_cache, sin_cache):
    """cos/sin expanded to (n, D): NeoX [cos,cos] per head, tiled over heads."""
    cos_t = cos_cache[pos]
    sin_t = sin_cache[pos]
    cos_h = jnp.concatenate([cos_t, cos_t], axis=-1)
    sin_h = jnp.concatenate([sin_t, sin_t], axis=-1)
    return jnp.tile(cos_h, (1, NUM_HEADS)), jnp.tile(sin_h, (1, NUM_HEADS))


def _rotate_half_block():
    half = ROT_DIM // 2
    blk = jnp.zeros((D_HEAD, D_HEAD), jnp.float32)
    idx = jnp.arange(half)
    blk = blk.at[idx + half, idx].set(-1.0)
    blk = blk.at[idx, idx + half].set(1.0)
    return blk


@partial(jax.jit, static_argnames=("tile",))
def _isotropic_jit(x_flat, cu, stage, cos_cache, sin_cache, *, tile):
    n = x_flat.shape[0]
    n_pad = ((n + tile - 1) // tile) * tile
    nseq = cu.shape[0] - 1
    cu32 = cu.astype(jnp.int32)

    # per-token segment id (duplicate-boundary safe) + per-sequence positions
    tok = jnp.arange(n_pad, dtype=jnp.int32)
    seg = jnp.searchsorted(cu32[1:-1], tok, side="right").astype(jnp.int32)
    seg = jnp.where(tok >= n, nseq, seg)                  # padded tokens: own segment
    pos = tok - cu32[seg]
    cos32, sin32 = _rope_tables(pos, cos_cache, sin_cache)

    xp = jnp.pad(x_flat.astype(jnp.float32), ((0, n_pad - n), (0, 0)))
    seg_row = seg.reshape(n_pad, 1)
    seg_col = seg.reshape(1, n_pad)

    x = xp
    res = jnp.zeros_like(xp)
    nl = len(stage["layers"])
    for li, lp in enumerate(stage["layers"]):
        q, k, v, residual = qkv_pallas(x, res, cos32, sin32, lp, tile)
        x, res = flash_block_pallas(q, k, v, residual, seg_row, seg_col, lp,
                                    stage["norm_f"],
                                    final_norm=(li == nl - 1), tile=tile)
    return x[:n]          # last block already applied the final add + RMSNorm


def isotropic_forward(x_flat, cu, stage, cos_cache, sin_cache):
    _, tile = _pad_tile(x_flat.shape[0])
    return _isotropic_jit(x_flat, cu, stage, cos_cache, sin_cache, tile=tile)


@partial(jax.jit, static_argnames=("tile",))
def _routing_jit(r, cu, rp, *, tile):
    n, d = r.shape
    n_pad = ((n + tile - 1) // tile) * tile
    cu32 = cu.astype(jnp.int32)
    r32 = r.astype(jnp.float32)
    r_prev = jnp.concatenate([jnp.zeros((1, d), jnp.float32), r32[:-1]], axis=0)
    tok = jnp.arange(n_pad, dtype=jnp.int32)
    is_start = jnp.any(tok[:, None] == cu32[None, :-1], axis=-1)
    is_start = is_start.astype(jnp.float32).reshape(n_pad, 1)
    pad = n_pad - n
    r_pad = jnp.pad(r32, ((0, pad), (0, 0)))
    rprev_pad = jnp.pad(r_prev, ((0, pad), (0, 0)))

    tok_spec = pl.BlockSpec((tile, D), lambda i: (i, 0))
    col_spec = pl.BlockSpec((tile, 1), lambda i: (i, 0))
    w_spec = pl.BlockSpec((D, D), lambda i: (0, 0))
    p_col = pl.pallas_call(
        _routing_kernel,
        grid=(n_pad // tile,),
        in_specs=[tok_spec, tok_spec, col_spec, w_spec, w_spec],
        out_specs=col_spec,
        out_shape=jax.ShapeDtypeStruct((n_pad, 1), jnp.float32),
        compiler_params=_cparams("parallel"),
    )(r_pad, rprev_pad, is_start, rp["q_proj_t"], rp["k_proj_t"])
    p = p_col[:n, 0]
    return p, p >= 0.5


@partial(jax.jit, static_argnames=("tile",))
def _dechunk_jit(h_out, p_sel, cu_inner, *, tile):
    m, d = h_out.shape
    m_pad = ((m + tile - 1) // tile) * tile
    nseq = cu_inner.shape[0] - 1
    cu32 = cu_inner.astype(jnp.int32)
    tok = jnp.arange(m_pad, dtype=jnp.int32)
    seg = jnp.searchsorted(cu32[1:-1], tok, side="right").astype(jnp.int32)
    seg = jnp.where(tok >= m, nseq, seg)

    # per-sequence inclusive cumsum of log(1-p) (precomputed; no in-kernel (m,m) reductions)
    p = jnp.clip(p_sel.astype(jnp.float32), 1e-4, 1.0 - 1e-4)
    lp = jnp.log1p(-p)
    s_all = jnp.cumsum(lp)
    seg_start = cu32[seg[:m]]
    s_before = jnp.where(seg_start > 0, s_all[jnp.maximum(seg_start - 1, 0)], 0.0)
    s_reset = s_all - s_before

    pad = m_pad - m
    p_pad = jnp.pad(p, (0, pad))
    s_pad = jnp.pad(s_reset, (0, pad))
    x_pad = jnp.pad(h_out.astype(jnp.float32), ((0, pad), (0, 0)))

    row_spec = pl.BlockSpec((tile, 1), lambda i: (i, 0))
    full_col = pl.BlockSpec((1, m_pad), lambda i: (0, 0))
    z = pl.pallas_call(
        partial(_dechunk_kernel, tile=tile),
        grid=(m_pad // tile,),
        in_specs=[pl.BlockSpec((m_pad, D), lambda i: (0, 0)),
                  full_col, full_col, full_col,
                  row_spec, row_spec],
        out_specs=pl.BlockSpec((tile, D), lambda i: (i, 0)),
        out_shape=jax.ShapeDtypeStruct((m_pad, D), jnp.float32),
        compiler_params=_cparams("parallel"),
    )(x_pad, p_pad.reshape(1, m_pad), s_pad.reshape(1, m_pad),
      seg.reshape(1, m_pad), s_pad.reshape(m_pad, 1), seg.reshape(m_pad, 1))
    return z[:m]


@partial(jax.jit, static_argnames=("tile",))
def _merge_jit(r, z_full, w_t, bias, *, tile):
    n, _ = r.shape
    n_pad = ((n + tile - 1) // tile) * tile
    pad = n_pad - n
    r_pad = jnp.pad(r.astype(jnp.float32), ((0, pad), (0, 0)))
    z_pad = jnp.pad(z_full.astype(jnp.float32), ((0, pad), (0, 0)))
    tok_spec = pl.BlockSpec((tile, D), lambda i: (i, 0))
    out = pl.pallas_call(
        _merge_kernel,
        grid=(n_pad // tile,),
        in_specs=[tok_spec, tok_spec,
                  pl.BlockSpec((D, D), lambda i: (0, 0)),
                  pl.BlockSpec((1, D), lambda i: (0, 0))],
        out_specs=tok_spec,
        out_shape=jax.ShapeDtypeStruct((n_pad, D), jnp.float32),
        compiler_params=_cparams("parallel"),
    )(r_pad, z_pad, w_t, bias)
    return out[:n]


def hnet_forward(x_values, cu, params, cos_cache, sin_cache):
    # NOTE: top-level stays eager because the jagged token selection below has
    # data-dependent shapes (jnp.where without static size) -- do not jit this.
    d_orig = x_values.shape[-1]

    # encoder
    r = isotropic_forward(x_values, cu, params["encoder"], cos_cache, sin_cache)

    # routing
    _, tile_r = _pad_tile(r.shape[0])
    p, b = _routing_jit(r, cu, params["routing"], tile=tile_r)

    sel_idx = jnp.where(b)[0]                 # eager: data-dependent selection
    p_sel = p[sel_idx]
    csum = jnp.concatenate([jnp.zeros((1,), jnp.int32),
                            jnp.cumsum(b.astype(jnp.int32))])
    cu_inner = csum[cu]

    # inner (innermost) HNet == Isotropic over selected tokens
    h = r[sel_idx]
    h_out = isotropic_forward(h, cu_inner, params["main"], cos_cache, sin_cache)
    h_out = h_out[..., :d_orig]               # no-op (no pad dimension)
    r_loss_inner = 0.0
    comp_ratio = [int(p_sel.shape[0]) / int(p.shape[0])]

    # dechunk: EMA over selected tokens, scatter back to outer tokens
    _, tile_m = _pad_tile(h_out.shape[0])
    z = _dechunk_jit(h_out, p_sel, cu_inner, tile=tile_m)
    inner2outer = jnp.cumsum(b.astype(jnp.int32)) - 1
    z_full = z[inner2outer]

    # straight-through merge (ste(c) == 1 in forward) fused with residual_proj
    x2 = _merge_jit(r, z_full, params["residual_proj_w_t"],
                    params["residual_proj_b"], tile=tile_r)

    # decoder
    dec = isotropic_forward(x2, cu, params["decoder"], cos_cache, sin_cache)
    out = dec[..., :d_orig]

    # ratio loss
    nn_ratio = N_COMPRESS_RATIO
    l = float(b.shape[0])
    f = jnp.sum(b.astype(jnp.float32)) / l
    g = jnp.sum(p) / l
    loss = nn_ratio * f * g + nn_ratio * (1.0 - f) * (1.0 - g) / (nn_ratio - 1.0)
    return out, r_loss_inner + loss, comp_ratio


# ------------------------------ parameter init --------------------------------
def init_params(key):
    keys = list(jax.random.split(key, 64))
    it = iter(keys)
    scale_q = 1.0 / math.sqrt(D_HEAD)                 # softmax scale folded into Wq
    rot = jnp.kron(jnp.eye(NUM_HEADS, dtype=jnp.float32), _rotate_half_block())

    def lin_t(out_f, in_f, scale=0.02):
        # torch-layout (out,in) weight, stored pre-transposed (in,out)
        w = scale * jax.random.normal(next(it), (out_f, in_f), jnp.float32)
        return jnp.transpose(w)

    def iso(n_layers):
        layers = []
        for _ in range(n_layers):
            wq = lin_t(D, D) * scale_q
            wk = lin_t(D, D)
            layers.append(dict(
                norm1=jnp.ones((1, D), jnp.float32),
                norm2=jnp.ones((1, D), jnp.float32),
                wq_t=wq.astype(jnp.bfloat16),
                wq_rot_t=(wq @ rot).astype(jnp.bfloat16),     # rope fold: x@(Wq R)
                wk_t=wk.astype(jnp.bfloat16),
                wk_rot_t=(wk @ rot).astype(jnp.bfloat16),
                wv_t=lin_t(D, D).astype(jnp.bfloat16),
                wo_t=lin_t(D, D).astype(jnp.bfloat16),
                w1_t=lin_t(D_MLP, D).astype(jnp.bfloat16),    # fc1 "h" half
                wg_t=lin_t(D_MLP, D).astype(jnp.bfloat16),    # fc1 "gate" half
                w2_t=lin_t(D, D_MLP).astype(jnp.bfloat16),
            ))
        return dict(layers=layers, norm_f=jnp.ones((1, D), jnp.float32))

    return dict(
        encoder=iso(N_ENC_LAYERS),
        main=iso(N_MAIN_LAYERS),
        decoder=iso(N_DEC_LAYERS),
        routing=dict(q_proj_t=jnp.eye(D, dtype=jnp.float32),  # RoutingModule init
                     k_proj_t=jnp.eye(D, dtype=jnp.float32)),
        residual_proj_w_t=jnp.zeros((D, D), jnp.float32),     # HighPrecLinear: zero W, f32
        residual_proj_b=0.01 * jax.random.normal(next(it), (1, D), jnp.float32),
    )


# ----------------------------------- main --------------------------------------
if __name__ == "__main__":
    key = jax.random.PRNGKey(0)
    pkey, xkey = jax.random.split(key)
    params = init_params(pkey)
    cos_cache, sin_cache = rope_cache(ROPE_BASE, ROT_DIM, ROPE_MSL)

    # jagged batch of 2 sequences, lengths (10, 14), hidden 32
    cu = jnp.array([0, 10, 24], dtype=jnp.int32)
    x_values = jax.random.normal(xkey, (24, D), dtype=jnp.float32)

    out, loss, comp_ratio = hnet_forward(x_values, cu, params, cos_cache, sin_cache)
    out = jax.block_until_ready(out)
    loss = jax.block_until_ready(loss)

    assert out.shape == (24, D) and out.dtype == jnp.float32
    assert bool(jnp.all(jnp.isfinite(out))) and bool(jnp.isfinite(loss))
    assert len(comp_ratio) == 1
    print("KERNEL_OK")
</pallas_src>

<mosaic_0001>
module attributes {stable_mosaic.version = 11 : i64} {
  func.func @_qkv_kernel(%arg0: i32, %arg1: memref<24x32xf32, #tpu.memory_space<vmem>>, %arg2: memref<24x32xf32, #tpu.memory_space<vmem>>, %arg3: memref<24x32xf32, #tpu.memory_space<vmem>>, %arg4: memref<24x32xf32, #tpu.memory_space<vmem>>, %arg5: memref<1x32xf32, #tpu.memory_space<vmem>>, %arg6: memref<32x32xbf16, #tpu.memory_space<vmem>>, %arg7: memref<32x32xbf16, #tpu.memory_space<vmem>>, %arg8: memref<32x32xbf16, #tpu.memory_space<vmem>>, %arg9: memref<32x32xbf16, #tpu.memory_space<vmem>>, %arg10: memref<32x32xbf16, #tpu.memory_space<vmem>>, %arg11: memref<24x32xbf16, #tpu.memory_space<vmem>>, %arg12: memref<24x32xbf16, #tpu.memory_space<vmem>>, %arg13: memref<24x32xbf16, #tpu.memory_space<vmem>>, %arg14: memref<24x32xf32, #tpu.memory_space<vmem>>) attributes {dimension_semantics = [#tpu.dimension_semantics<parallel>], iteration_bounds = array<i64: 1>, scalar_prefetch = 0 : i64, scratch_operands = 0 : i64, tpu.core_type = #tpu.core_type<tc>, window_params = [{transform_indices = @transform_0, window_bounds = array<i64: 24, 32>}, {transform_indices = @transform_1, window_bounds = array<i64: 24, 32>}, {transform_indices = @transform_2, window_bounds = array<i64: 24, 32>}, {transform_indices = @transform_3, window_bounds = array<i64: 24, 32>}, {pipeline_mode = #tpu.pipeline_mode<synchronous>, transform_indices = @transform_4, window_bounds = array<i64: 1, 32>}, {pipeline_mode = #tpu.pipeline_mode<synchronous>, transform_indices = @transform_5, window_bounds = array<i64: 32, 32>}, {pipeline_mode = #tpu.pipeline_mode<synchronous>, transform_indices = @transform_6, window_bounds = array<i64: 32, 32>}, {pipeline_mode = #tpu.pipeline_mode<synchronous>, transform_indices = @transform_7, window_bounds = array<i64: 32, 32>}, {pipeline_mode = #tpu.pipeline_mode<synchronous>, transform_indices = @transform_8, window_bounds = array<i64: 32, 32>}, {pipeline_mode = #tpu.pipeline_mode<synchronous>, transform_indices = @transform_9, window_bounds = array<i64: 32, 32>}, {transform_indices = @transform_10, window_bounds = array<i64: 24, 32>}, {transform_indices = @transform_11, window_bounds = array<i64: 24, 32>}, {transform_indices = @transform_12, window_bounds = array<i64: 24, 32>}, {transform_indices = @transform_13, window_bounds = array<i64: 24, 32>}]} {
    %c0 = arith.constant 0 : index
    %c0_0 = arith.constant 0 : index
    %0 = vector.load %arg1[%c0, %c0_0] : memref<24x32xf32, #tpu.memory_space<vmem>>, vector<24x32xf32>
    %c0_1 = arith.constant 0 : index
    %c0_2 = arith.constant 0 : index
    %1 = vector.load %arg2[%c0_1, %c0_2] : memref<24x32xf32, #tpu.memory_space<vmem>>, vector<24x32xf32>
    %2 = arith.addf %0, %1 : vector<24x32xf32>
    %3 = arith.mulf %2, %2 : vector<24x32xf32>
    %cst = arith.constant dense<0.000000e+00> : vector<24xf32>
    %4 = vector.multi_reduction <add>, %3, %cst [1] : vector<24x32xf32> to vector<24xf32>
    %5 = vector.shape_cast %4 : vector<24xf32> to vector<24x1xf32>
    %cst_3 = arith.constant 3.200000e+01 : f32
    %6 = vector.broadcast %cst_3 : f32 to vector<24x1xf32>
    %7 = arith.divf %5, %6 : vector<24x1xf32>
    %cst_4 = arith.constant 9.99999974E-6 : f32
    %8 = vector.broadcast %cst_4 : f32 to vector<24x1xf32>
    %9 = arith.addf %7, %8 : vector<24x1xf32>
    %10 = math.rsqrt %9 : vector<24x1xf32>
    %11 = vector.broadcast %10 : vector<24x1xf32> to vector<24x32xf32>
    %12 = arith.mulf %2, %11 : vector<24x32xf32>
    %c0_5 = arith.constant 0 : index
    %c0_6 = arith.constant 0 : index
    %13 = vector.load %arg5[%c0_5, %c0_6] : memref<1x32xf32, #tpu.memory_space<vmem>>, vector<1x32xf32>
    %14 = vector.broadcast %13 : vector<1x32xf32> to vector<24x32xf32>
    %15 = arith.mulf %12, %14 : vector<24x32xf32>
    %16 = arith.truncf %15 : vector<24x32xf32> to vector<24x32xbf16>
    %c0_7 = arith.constant 0 : index
    %c0_8 = arith.constant 0 : index
    %17 = vector.load %arg3[%c0_7, %c0_8] : memref<24x32xf32, #tpu.memory_space<vmem>>, vector<24x32xf32>
    %c0_9 = arith.constant 0 : index
    %c0_10 = arith.constant 0 : index
    %18 = vector.load %arg4[%c0_9, %c0_10] : memref<24x32xf32, #tpu.memory_space<vmem>>, vector<24x32xf32>
    %c0_11 = arith.constant 0 : index
    %c0_12 = arith.constant 0 : index
    %19 = vector.load %arg6[%c0_11, %c0_12] : memref<32x32xbf16, #tpu.memory_space<vmem>>, vector<32x32xbf16>
    %cst_13 = arith.constant dense<0.000000e+00> : vector<24x32xf32>
    %20 = tpu.matmul %16, %19, %cst_13 {dimension_numbers = #tpu.dot_dimension_numbers<[1], [0], [0], [1], [0, 0, 1, 1], [], []>} : vector<24x32xbf16>, vector<32x32xbf16>, vector<24x32xf32> -> vector<24x32xf32>
    %c0_14 = arith.constant 0 : index
    %c0_15 = arith.constant 0 : index
    %21 = vector.load %arg7[%c0_14, %c0_15] : memref<32x32xbf16, #tpu.memory_space<vmem>>, vector<32x32xbf16>
    %cst_16 = arith.constant dense<0.000000e+00> : vector<24x32xf32>
    %22 = tpu.matmul %16, %21, %cst_16 {dimension_numbers = #tpu.dot_dimension_numbers<[1], [0], [0], [1], [0, 0, 1, 1], [], []>} : vector<24x32xbf16>, vector<32x32xbf16>, vector<24x32xf32> -> vector<24x32xf32>
    %c0_17 = arith.constant 0 : index
    %c0_18 = arith.constant 0 : index
    %23 = vector.load %arg8[%c0_17, %c0_18] : memref<32x32xbf16, #tpu.memory_space<vmem>>, vector<32x32xbf16>
    %cst_19 = arith.constant dense<0.000000e+00> : vector<24x32xf32>
    %24 = tpu.matmul %16, %23, %cst_19 {dimension_numbers = #tpu.dot_dimension_numbers<[1], [0], [0], [1], [0, 0, 1, 1], [], []>} : vector<24x32xbf16>, vector<32x32xbf16>, vector<24x32xf32> -> vector<24x32xf32>
    %c0_20 = arith.constant 0 : index
    %c0_21 = arith.constant 0 : index
    %25 = vector.load %arg9[%c0_20, %c0_21] : memref<32x32xbf16, #tpu.memory_space<vmem>>, vector<32x32xbf16>
    %cst_22 = arith.constant dense<0.000000e+00> : vector<24x32xf32>
    %26 = tpu.matmul %16, %25, %cst_22 {dimension_numbers = #tpu.dot_dimension_numbers<[1], [0], [0], [1], [0, 0, 1, 1], [], []>} : vector<24x32xbf16>, vector<32x32xbf16>, vector<24x32xf32> -> vector<24x32xf32>
    %27 = arith.mulf %20, %17 : vector<24x32xf32>
    %28 = arith.mulf %22, %18 : vector<24x32xf32>
    %29 = arith.addf %27, %28 : vector<24x32xf32>
    %30 = arith.truncf %29 : vector<24x32xf32> to vector<24x32xbf16>
    %c0_23 = arith.constant 0 : index
    %c0_24 = arith.constant 0 : index
    %31 = vector.load %arg11[%c0_23, %c0_24] : memref<24x32xbf16, #tpu.memory_space<vmem>>, vector<24x32xbf16>
    tpu.vector_store %arg11[%c0_23, %c0_24], %30 {strides = array<i32>} : memref<24x32xbf16, #tpu.memory_space<vmem>>, vector<24x32xbf16>,
    %32 = arith.mulf %24, %17 : vector<24x32xf32>
    %33 = arith.mulf %26, %18 : vector<24x32xf32>
    %34 = arith.addf %32, %33 : vector<24x32xf32>
    %35 = arith.truncf %34 : vector<24x32xf32> to vector<24x32xbf16>
    %c0_25 = arith.constant 0 : index
    %c0_26 = arith.constant 0 : index
    %36 = vector.load %arg12[%c0_25, %c0_26] : memref<24x32xbf16, #tpu.memory_space<vmem>>, vector<24x32xbf16>
    tpu.vector_store %arg12[%c0_25, %c0_26], %35 {strides = array<i32>} : memref<24x32xbf16, #tpu.memory_space<vmem>>, vector<24x32xbf16>,
    %c0_27 = arith.constant 0 : index
    %c0_28 = arith.constant 0 : index
    %37 = vector.load %arg10[%c0_27, %c0_28] : memref<32x32xbf16, #tpu.memory_space<vmem>>, vector<32x32xbf16>
    %cst_29 = arith.constant dense<0.000000e+00> : vector<24x32xf32>
    %38 = tpu.matmul %16, %37, %cst_29 {dimension_numbers = #tpu.dot_dimension_numbers<[1], [0], [0], [1], [0, 0, 1, 1], [], []>} : vector<24x32xbf16>, vector<32x32xbf16>, vector<24x32xf32> -> vector<24x32xf32>
    %39 = arith.truncf %38 : vector<24x32xf32> to vector<24x32xbf16>
    %c0_30 = arith.constant 0 : index
    %c0_31 = arith.constant 0 : index
    %40 = vector.load %arg13[%c0_30, %c0_31] : memref<24x32xbf16, #tpu.memory_space<vmem>>, vector<24x32xbf16>
    tpu.vector_store %arg13[%c0_30, %c0_31], %39 {strides = array<i32>} : memref<24x32xbf16, #tpu.memory_space<vmem>>, vector<24x32xbf16>,
    %c0_32 = arith.constant 0 : index
    %c0_33 = arith.constant 0 : index
    %41 = vector.load %arg14[%c0_32, %c0_33] : memref<24x32xf32, #tpu.memory_space<vmem>>, vector<24x32xf32>
    tpu.vector_store %arg14[%c0_32, %c0_33], %2 {strides = array<i32>} : memref<24x32xf32, #tpu.memory_space<vmem>>, vector<24x32xf32>,
    return
  }
  func.func @transform_0(%arg0: i32) -> (i32, i32) {
    %c0_i32 = arith.constant 0 : i32
    %c0_i32_0 = arith.constant 0 : i32
    return %arg0, %c0_i32 : i32, i32
  }
  func.func @transform_1(%arg0: i32) -> (i32, i32) {
    %c0_i32 = arith.constant 0 : i32
    %c0_i32_0 = arith.constant 0 : i32
    return %arg0, %c0_i32 : i32, i32
  }
  func.func @transform_2(%arg0: i32) -> (i32, i32) {
    %c0_i32 = arith.constant 0 : i32
    %c0_i32_0 = arith.constant 0 : i32
    return %arg0, %c0_i32 : i32, i32
  }
  func.func @transform_3(%arg0: i32) -> (i32, i32) {
    %c0_i32 = arith.constant 0 : i32
    %c0_i32_0 = arith.constant 0 : i32
    return %arg0, %c0_i32 : i32, i32
  }
  func.func @transform_4(%arg0: i32) -> (i32, i32) {
    %c0_i32 = arith.constant 0 : i32
    %c0_i32_0 = arith.constant 0 : i32
    %c0_i32_1 = arith.constant 0 : i32
    return %c0_i32, %c0_i32_0 : i32, i32
  }
  func.func @transform_5(%arg0: i32) -> (i32, i32) {
    %c0_i32 = arith.constant 0 : i32
    %c0_i32_0 = arith.constant 0 : i32
    %c0_i32_1 = arith.constant 0 : i32
    return %c0_i32, %c0_i32_0 : i32, i32
  }
  func.func @transform_6(%arg0: i32) -> (i32, i32) {
    %c0_i32 = arith.constant 0 : i32
    %c0_i32_0 = arith.constant 0 : i32
    %c0_i32_1 = arith.constant 0 : i32
    return %c0_i32, %c0_i32_0 : i32, i32
  }
  func.func @transform_7(%arg0: i32) -> (i32, i32) {
    %c0_i32 = arith.constant 0 : i32
    %c0_i32_0 = arith.constant 0 : i32
    %c0_i32_1 = arith.constant 0 : i32
    return %c0_i32, %c0_i32_0 : i32, i32
  }
  func.func @transform_8(%arg0: i32) -> (i32, i32) {
    %c0_i32 = arith.constant 0 : i32
    %c0_i32_0 = arith.constant 0 : i32
    %c0_i32_1 = arith.constant 0 : i32
    return %c0_i32, %c0_i32_0 : i32, i32
  }
  func.func @transform_9(%arg0: i32) -> (i32, i32) {
    %c0_i32 = arith.constant 0 : i32
    %c0_i32_0 = arith.constant 0 : i32
    %c0_i32_1 = arith.constant 0 : i32
    return %c0_i32, %c0_i32_0 : i32, i32
  }
  func.func @transform_10(%arg0: i32) -> (i32, i32) {
    %c0_i32 = arith.constant 0 : i32
    %c0_i32_0 = arith.constant 0 : i32
    return %arg0, %c0_i32 : i32, i32
  }
  func.func @transform_11(%arg0: i32) -> (i32, i32) {
    %c0_i32 = arith.constant 0 : i32
    %c0_i32_0 = arith.constant 0 : i32
    return %arg0, %c0_i32 : i32, i32
  }
  func.func @transform_12(%arg0: i32) -> (i32, i32) {
    %c0_i32 = arith.constant 0 : i32
    %c0_i32_0 = arith.constant 0 : i32
    return %arg0, %c0_i32 : i32, i32
  }
  func.func @transform_13(%arg0: i32) -> (i32, i32) {
    %c0_i32 = arith.constant 0 : i32
    %c0_i32_0 = arith.constant 0 : i32
    return %arg0, %c0_i32 : i32, i32
  }
}

module attributes {stable_mosaic.version = 11 : i64} {
  func.func @_flash_mlp_kernel(%arg0: i32, %arg1: i32, %arg2: memref<24x32xbf16, #tpu.memory_space<vmem>>, %arg3: memref<24x32xbf16, #tpu.memory_space<vmem>>, %arg4: memref<24x32xbf16, #tpu.memory_space<vmem>>, %arg5: memref<24x32xf32, #tpu.memory_space<vmem>>, %arg6: memref<24x1xi32, #tpu.memory_space<vmem>>, %arg7: memref<1x24xi32, #tpu.memory_space<vmem>>, %arg8: memref<32x32xbf16, #tpu.memory_space<vmem>>, %arg9: memref<1x32xf32, #tpu.memory_space<vmem>>, %arg10: memref<1x32xf32, #tpu.memory_space<vmem>>, %arg11: memref<32x64xbf16, #tpu.memory_space<vmem>>, %arg12: memref<32x64xbf16, #tpu.memory_space<vmem>>, %arg13: memref<64x32xbf16, #tpu.memory_space<vmem>>, %arg14: memref<24x32xf32, #tpu.memory_space<vmem>>, %arg15: memref<24x32xf32, #tpu.memory_space<vmem>>, %arg16: memref<24x4xf32, #tpu.memory_space<vmem>>, %arg17: memref<24x4xf32, #tpu.memory_space<vmem>>, %arg18: memref<24x32xf32, #tpu.memory_space<vmem>>) attributes {dimension_semantics = [#tpu.dimension_semantics<parallel>, #tpu.dimension_semantics<arbitrary>], iteration_bounds = array<i64: 1, 1>, scalar_prefetch = 0 : i64, scratch_operands = 3 : i64, tpu.core_type = #tpu.core_type<tc>, window_params = [{transform_indices = @transform_0, window_bounds = array<i64: 24, 32>}, {transform_indices = @transform_1, window_bounds = array<i64: 24, 32>}, {transform_indices = @transform_2, window_bounds = array<i64: 24, 32>}, {transform_indices = @transform_3, window_bounds = array<i64: 24, 32>}, {transform_indices = @transform_4, window_bounds = array<i64: 24, 1>}, {transform_indices = @transform_5, window_bounds = array<i64: 1, 24>}, {pipeline_mode = #tpu.pipeline_mode<synchronous>, transform_indices = @transform_6, window_bounds = array<i64: 32, 32>}, {pipeline_mode = #tpu.pipeline_mode<synchronous>, transform_indices = @transform_7, window_bounds = array<i64: 1, 32>}, {pipeline_mode = #tpu.pipeline_mode<synchronous>, transform_indices = @transform_8, window_bounds = array<i64: 1, 32>}, {pipeline_mode = #tpu.pipeline_mode<synchronous>, transform_indices = @transform_9, window_bounds = array<i64: 32, 64>}, {pipeline_mode = #tpu.pipeline_mode<synchronous>, transform_indices = @transform_10, window_bounds = array<i64: 32, 64>}, {pipeline_mode = #tpu.pipeline_mode<synchronous>, transform_indices = @transform_11, window_bounds = array<i64: 64, 32>}, {transform_indices = @transform_12, window_bounds = array<i64: 24, 32>}, {transform_indices = @transform_13, window_bounds = array<i64: 24, 32>}]} {
    %c0_i32 = arith.constant 0 : i32
    %0 = arith.cmpi eq, %arg1, %c0_i32 : i32
    %1 = arith.extui %0 : i1 to i32
    %c0_i32_0 = arith.constant 0 : i32
    %2 = arith.cmpi ne, %1, %c0_i32_0 : i32
    scf.if %2 {
      %cst = arith.constant -1.000000e+30 : f32
      %9 = vector.broadcast %cst : f32 to vector<24x4xf32>
      %c0 = arith.constant 0 : index
      %c0_4 = arith.constant 0 : index
      %10 = vector.load %arg16[%c0, %c0_4] : memref<24x4xf32, #tpu.memory_space<vmem>>, vector<24x4xf32>
      tpu.vector_store %arg16[%c0, %c0_4], %9 {strides = array<i32>} : memref<24x4xf32, #tpu.memory_space<vmem>>, vector<24x4xf32>,
      %cst_5 = arith.constant 0.000000e+00 : f32
      %11 = vector.broadcast %cst_5 : f32 to vector<24x4xf32>
      %c0_6 = arith.constant 0 : index
      %c0_7 = arith.constant 0 : index
      %12 = vector.load %arg17[%c0_6, %c0_7] : memref<24x4xf32, #tpu.memory_space<vmem>>, vector<24x4xf32>
      tpu.vector_store %arg17[%c0_6, %c0_7], %11 {strides = array<i32>} : memref<24x4xf32, #tpu.memory_space<vmem>>, vector<24x4xf32>,
      %cst_8 = arith.constant 0.000000e+00 : f32
      %13 = vector.broadcast %cst_8 : f32 to vector<24x32xf32>
      %c0_9 = arith.constant 0 : index
      %c0_10 = arith.constant 0 : index
      %14 = vector.load %arg18[%c0_9, %c0_10] : memref<24x32xf32, #tpu.memory_space<vmem>>, vector<24x32xf32>
      tpu.vector_store %arg18[%c0_9, %c0_10], %13 {strides = array<i32>} : memref<24x32xf32, #tpu.memory_space<vmem>>, vector<24x32xf32>,
    } else {
    }
    %3 = arith.cmpi sle, %arg1, %arg0 : i32
    %4 = arith.extui %3 : i1 to i32
    %c0_i32_1 = arith.constant 0 : i32
    %5 = arith.cmpi ne, %4, %c0_i32_1 : i32
    scf.if %5 {
      %c0 = arith.constant 0 : index
      %c0_4 = arith.constant 0 : index
      %9 = vector.load %arg2[%c0, %c0_4] : memref<24x32xbf16, #tpu.memory_space<vmem>>, vector<24x32xbf16>
      %c0_5 = arith.constant 0 : index
      %c0_6 = arith.constant 0 : index
      %10 = vector.load %arg3[%c0_5, %c0_6] : memref<24x32xbf16, #tpu.memory_space<vmem>>, vector<24x32xbf16>
      %c0_7 = arith.constant 0 : index
      %c0_8 = arith.constant 0 : index
      %11 = vector.load %arg4[%c0_7, %c0_8] : memref<24x32xbf16, #tpu.memory_space<vmem>>, vector<24x32xbf16>
      %12 = tpu.iota {dimensions = array<i32: 0>} : vector<24x24xi32>
      %c24_i32 = arith.constant 24 : i32
      %13 = arith.muli %arg0, %c24_i32 : i32
      %14 = vector.broadcast %13 : i32 to vector<24x24xi32>
      %15 = arith.addi %12, %14 : vector<24x24xi32>
      %16 = tpu.iota {dimensions = array<i32: 1>} : vector<24x24xi32>
      %c24_i32_9 = arith.constant 24 : i32
      %17 = arith.muli %arg1, %c24_i32_9 : i32
      %18 = vector.broadcast %17 : i32 to vector<24x24xi32>
      %19 = arith.addi %16, %18 : vector<24x24xi32>
      %20 = arith.cmpi sle, %19, %15 : vector<24x24xi32>
      %c0_10 = arith.constant 0 : index
      %c0_11 = arith.constant 0 : index
      %21 = vector.load %arg6[%c0_10, %c0_11] : memref<24x1xi32, #tpu.memory_space<vmem>>, vector<24x1xi32>
      %c0_12 = arith.constant 0 : index
      %c0_13 = arith.constant 0 : index
      %22 = vector.load %arg7[%c0_12, %c0_13] : memref<1x24xi32, #tpu.memory_space<vmem>>, vector<1x24xi32>
      %23 = vector.broadcast %21 : vector<24x1xi32> to vector<24x24xi32>
      %24 = vector.broadcast %22 : vector<1x24xi32> to vector<24x24xi32>
      %25 = arith.cmpi eq, %23, %24 : vector<24x24xi32>
      %26 = arith.andi %20, %25 : vector<24x24xi1>
      %c0_14 = arith.constant 0 : index
      %c0_15 = arith.constant 0 : index
      %27 = vector.load %arg16[%c0_14, %c0_15] : memref<24x4xf32, #tpu.memory_space<vmem>>, vector<24x4xf32>
      %c0_16 = arith.constant 0 : index
      %c0_17 = arith.constant 0 : index
      %28 = vector.load %arg17[%c0_16, %c0_17] : memref<24x4xf32, #tpu.memory_space<vmem>>, vector<24x4xf32>
      %c0_18 = arith.constant 0 : index
      %c0_19 = arith.constant 0 : index
      %29 = vector.load %arg18[%c0_18, %c0_19] : memref<24x32xf32, #tpu.memory_space<vmem>>, vector<24x32xf32>
      %30 = vector.extract_strided_slice %9 {offsets = [0, 0], sizes = [24, 8], strides = [1, 1]} : vector<24x32xbf16> to vector<24x8xbf16>
      %31 = vector.extract_strided_slice %10 {offsets = [0, 0], sizes = [24, 8], strides = [1, 1]} : vector<24x32xbf16> to vector<24x8xbf16>
      %cst = arith.constant dense<0.000000e+00> : vector<24x24xf32>
      %32 = tpu.matmul %30, %31, %cst {dimension_numbers = #tpu.dot_dimension_numbers<[1], [1], [0], [0], [0, 0, 1, 0], [], []>} : vector<24x8xbf16>, vector<24x8xbf16>, vector<24x24xf32> -> vector<24x24xf32>
      %cst_20 = arith.constant -1.000000e+30 : f32
      %33 = vector.broadcast %cst_20 : f32 to vector<24x24xf32>
      %34 = arith.select %26, %32, %33 : vector<24x24xi1>, vector<24x24xf32>
      %35 = vector.extract_strided_slice %27 {offsets = [0, 0], sizes = [24, 1], strides = [1, 1]} : vector<24x4xf32> to vector<24x1xf32>
      %cst_21 = arith.constant dense<0xFF800000> : vector<24xf32>
      %36 = vector.multi_reduction <maximumf>, %34, %cst_21 [1] : vector<24x24xf32> to vector<24xf32>
      %37 = vector.shape_cast %36 : vector<24xf32> to vector<24x1xf32>
      %38 = arith.maximumf %35, %37 : vector<24x1xf32>
      %39 = arith.subf %35, %38 : vector<24x1xf32>
      %40 = math.exp %39 : vector<24x1xf32>
      %41 = vector.broadcast %38 : vector<24x1xf32> to vector<24x24xf32>
      %42 = arith.subf %34, %41 : vector<24x24xf32>
      %43 = math.exp %42 : vector<24x24xf32>
      %44 = vector.extract_strided_slice %28 {offsets = [0, 0], sizes = [24, 1], strides = [1, 1]} : vector<24x4xf32> to vector<24x1xf32>
      %45 = arith.mulf %40, %44 : vector<24x1xf32>
      %cst_22 = arith.constant dense<0.000000e+00> : vector<24xf32>
      %46 = vector.multi_reduction <add>, %43, %cst_22 [1] : vector<24x24xf32> to vector<24xf32>
      %47 = vector.shape_cast %46 : vector<24xf32> to vector<24x1xf32>
      %48 = arith.addf %45, %47 : vector<24x1xf32>
      %49 = vector.extract_strided_slice %29 {offsets = [0, 0], sizes = [24, 8], strides = [1, 1]} : vector<24x32xf32> to vector<24x8xf32>
      %50 = vector.broadcast %40 : vector<24x1xf32> to vector<24x8xf32>
      %51 = arith.mulf %50, %49 : vector<24x8xf32>
      %52 = arith.truncf %43 : vector<24x24xf32> to vector<24x24xbf16>
      %53 = vector.extract_strided_slice %11 {offsets = [0, 0], sizes = [24, 8], strides = [1, 1]} : vector<24x32xbf16> to vector<24x8xbf16>
      %cst_23 = arith.constant dense<0.000000e+00> : vector<24x8xf32>
      %54 = tpu.matmul %52, %53, %cst_23 {dimension_numbers = #tpu.dot_dimension_numbers<[1], [0], [0], [1], [0, 0, 1, 1], [], []>} : vector<24x24xbf16>, vector<24x8xbf16>, vector<24x8xf32> -> vector<24x8xf32>
      %55 = arith.addf %51, %54 : vector<24x8xf32>
      %56 = vector.extract_strided_slice %9 {offsets = [0, 8], sizes = [24, 8], strides = [1, 1]} : vector<24x32xbf16> to vector<24x8xbf16>
      %57 = vector.extract_strided_slice %10 {offsets = [0, 8], sizes = [24, 8], strides = [1, 1]} : vector<24x32xbf16> to vector<24x8xbf16>
      %cst_24 = arith.constant dense<0.000000e+00> : vector<24x24xf32>
      %58 = tpu.matmul %56, %57, %cst_24 {dimension_numbers = #tpu.dot_dimension_numbers<[1], [1], [0], [0], [0, 0, 1, 0], [], []>} : vector<24x8xbf16>, vector<24x8xbf16>, vector<24x24xf32> -> vector<24x24xf32>
      %cst_25 = arith.constant -1.000000e+30 : f32
      %59 = vector.broadcast %cst_25 : f32 to vector<24x24xf32>
      %60 = arith.select %26, %58, %59 : vector<24x24xi1>, vector<24x24xf32>
      %61 = vector.extract_strided_slice %27 {offsets = [0, 1], sizes = [24, 1], strides = [1, 1]} : vector<24x4xf32> to vector<24x1xf32>
      %cst_26 = arith.constant dense<0xFF800000> : vector<24xf32>
      %62 = vector.multi_reduction <maximumf>, %60, %cst_26 [1] : vector<24x24xf32> to vector<24xf32>
      %63 = vector.shape_cast %62 : vector<24xf32> to vector<24x1xf32>
      %64 = arith.maximumf %61, %63 : vector<24x1xf32>
      %65 = arith.subf %61, %64 : vector<24x1xf32>
      %66 = math.exp %65 : vector<24x1xf32>
      %67 = vector.broadcast %64 : vector<24x1xf32> to vector<24x24xf32>
      %68 = arith.subf %60, %67 : vector<24x24xf32>
      %69 = math.exp %68 : vector<24x24xf32>
      %70 = vector.extract_strided_slice %28 {offsets = [0, 1], sizes = [24, 1], strides = [1, 1]} : vector<24x4xf32> to vector<24x1xf32>
      %71 = arith.mulf %66, %70 : vector<24x1xf32>
      %cst_27 = arith.constant dense<0.000000e+00> : vector<24xf32>
      %72 = vector.multi_reduction <add>, %69, %cst_27 [1] : vector<24x24xf32> to vector<24xf32>
      %73 = vector.shape_cast %72 : vector<24xf32> to vector<24x1xf32>
      %74 = arith.addf %71, %73 : vector<24x1xf32>
      %75 = vector.extract_strided_slice %29 {offsets = [0, 8], sizes = [24, 8], strides = [1, 1]} : vector<24x32xf32> to vector<24x8xf32>
      %76 = vector.broadcast %66 : vector<24x1xf32> to vector<24x8xf32>
      %77 = arith.mulf %76, %75 : vector<24x8xf32>
      %78 = arith.truncf %69 : vector<24x24xf32> to vector<24x24xbf16>
      %79 = vector.extract_strided_slice %11 {offsets = [0, 8], sizes = [24, 8], strides = [1, 1]} : vector<24x32xbf16> to vector<24x8xbf16>
      %cst_28 = arith.constant dense<0.000000e+00> : vector<24x8xf32>
      %80 = tpu.matmul %78, %79, %cst_28 {dimension_numbers = #tpu.dot_dimension_numbers<[1], [0], [0], [1], [0, 0, 1, 1], [], []>} : vector<24x24xbf16>, vector<24x8xbf16>, vector<24x8xf32> -> vector<24x8xf32>
      %81 = arith.addf %77, %80 : vector<24x8xf32>
      %82 = vector.extract_strided_slice %9 {offsets = [0, 16], sizes = [24, 8], strides = [1, 1]} : vector<24x32xbf16> to vector<24x8xbf16>
      %83 = vector.extract_strided_slice %10 {offsets = [0, 16], sizes = [24, 8], strides = [1, 1]} : vector<24x32xbf16> to vector<24x8xbf16>
      %cst_29 = arith.constant dense<0.000000e+00> : vector<24x24xf32>
      %84 = tpu.matmul %82, %83, %cst_29 {dimension_numbers = #tpu.dot_dimension_numbers<[1], [1], [0], [0], [0, 0, 1, 0], [], []>} : vector<24x8xbf16>, vector<24x8xbf16>, vector<24x24xf32> -> vector<24x24xf32>
      %cst_30 = arith.constant -1.000000e+30 : f32
      %85 = vector.broadcast %cst_30 : f32 to vector<24x24xf32>
      %86 = arith.select %26, %84, %85 : vector<24x24xi1>, vector<24x24xf32>
      %87 = vector.extract_strided_slice %27 {offsets = [0, 2], sizes = [24, 1], strides = [1, 1]} : vector<24x4xf32> to vector<24x1xf32>
      %cst_31 = arith.constant dense<0xFF800000> : vector<24xf32>
      %88 = vector.multi_reduction <maximumf>, %86, %cst_31 [1] : vector<24x24xf32> to vector<24xf32>
      %89 = vector.shape_cast %88 : vector<24xf32> to vector<24x1xf32>
      %90 = arith.maximumf %87, %89 : vector<24x1xf32>
      %91 = arith.subf %87, %90 : vector<24x1xf32>
      %92 = math.exp %91 : vector<24x1xf32>
      %93 = vector.broadcast %90 : vector<24x1xf32> to vector<24x24xf32>
      %94 = arith.subf %86, %93 : vector<24x24xf32>
      %95 = math.exp %94 : vector<24x24xf32>
      %96 = vector.extract_strided_slice %28 {offsets = [0, 2], sizes = [24, 1], strides = [1, 1]} : vector<24x4xf32> to vector<24x1xf32>
      %97 = arith.mulf %92, %96 : vector<24x1xf32>
      %cst_32 = arith.constant dense<0.000000e+00> : vector<24xf32>
      %98 = vector.multi_reduction <add>, %95, %cst_32 [1] : vector<24x24xf32> to vector<24xf32>
      %99 = vector.shape_cast %98 : vector<24xf32> to vector<24x1xf32>
      %100 = arith.addf %97, %99 : vector<24x1xf32>
      %101 = vector.extract_strided_slice %29 {offsets = [0, 16], sizes = [24, 8], strides = [1, 1]} : vector<24x32xf32> to vector<24x8xf32>
      %102 = vector.broadcast %92 : vector<24x1xf32> to vector<24x8xf32>
      %103 = arith.mulf %102, %101 : vector<24x8xf32>
      %104 = arith.truncf %95 : vector<24x24xf32> to vector<24x24xbf16>
      %105 = vector.extract_strided_slice %11 {offsets = [0, 16], sizes = [24, 8], strides = [1, 1]} : vector<24x32xbf16> to vector<24x8xbf16>
      %cst_33 = arith.constant dense<0.000000e+00> : vector<24x8xf32>
      %106 = tpu.matmul %104, %105, %cst_33 {dimension_numbers = #tpu.dot_dimension_numbers<[1], [0], [0], [1], [0, 0, 1, 1], [], []>} : vector<24x24xbf16>, vector<24x8xbf16>, vector<24x8xf32> -> vector<24x8xf32>
      %107 = arith.addf %103, %106 : vector<24x8xf32>
      %108 = vector.extract_strided_slice %9 {offsets = [0, 24], sizes = [24, 8], strides = [1, 1]} : vector<24x32xbf16> to vector<24x8xbf16>
      %109 = vector.extract_strided_slice %10 {offsets = [0, 24], sizes = [24, 8], strides = [1, 1]} : vector<24x32xbf16> to vector<24x8xbf16>
      %cst_34 = arith.constant dense<0.000000e+00> : vector<24x24xf32>
      %110 = tpu.matmul %108, %109, %cst_34 {dimension_numbers = #tpu.dot_dimension_numbers<[1], [1], [0], [0], [0, 0, 1, 0], [], []>} : vector<24x8xbf16>, vector<24x8xbf16>, vector<24x24xf32> -> vector<24x24xf32>
      %cst_35 = arith.constant -1.000000e+30 : f32
      %111 = vector.broadcast %cst_35 : f32 to vector<24x24xf32>
      %112 = arith.select %26, %110, %111 : vector<24x24xi1>, vector<24x24xf32>
      %113 = vector.extract_strided_slice %27 {offsets = [0, 3], sizes = [24, 1], strides = [1, 1]} : vector<24x4xf32> to vector<24x1xf32>
      %cst_36 = arith.constant dense<0xFF800000> : vector<24xf32>
      %114 = vector.multi_reduction <maximumf>, %112, %cst_36 [1] : vector<24x24xf32> to vector<24xf32>
      %115 = vector.shape_cast %114 : vector<24xf32> to vector<24x1xf32>
      %116 = arith.maximumf %113, %115 : vector<24x1xf32>
      %117 = arith.subf %113, %116 : vector<24x1xf32>
      %118 = math.exp %117 : vector<24x1xf32>
      %119 = vector.broadcast %116 : vector<24x1xf32> to vector<24x24xf32>
      %120 = arith.subf %112, %119 : vector<24x24xf32>
      %121 = math.exp %120 : vector<24x24xf32>
      %122 = vector.extract_strided_slice %28 {offsets = [0, 3], sizes = [24, 1], strides = [1, 1]} : vector<24x4xf32> to vector<24x1xf32>
      %123 = arith.mulf %118, %122 : vector<24x1xf32>
      %cst_37 = arith.constant dense<0.000000e+00> : vector<24xf32>
      %124 = vector.multi_reduction <add>, %121, %cst_37 [1] : vector<24x24xf32> to vector<24xf32>
      %125 = vector.shape_cast %124 : vector<24xf32> to vector<24x1xf32>
      %126 = arith.addf %123, %125 : vector<24x1xf32>
      %127 = vector.extract_strided_slice %29 {offsets = [0, 24], sizes = [24, 8], strides = [1, 1]} : vector<24x32xf32> to vector<24x8xf32>
      %128 = vector.broadcast %118 : vector<24x1xf32> to vector<24x8xf32>
      %129 = arith.mulf %128, %127 : vector<24x8xf32>
      %130 = arith.truncf %121 : vector<24x24xf32> to vector<24x24xbf16>
      %131 = vector.extract_strided_slice %11 {offsets = [0, 24], sizes = [24, 8], strides = [1, 1]} : vector<24x32xbf16> to vector<24x8xbf16>
      %cst_38 = arith.constant dense<0.000000e+00> : vector<24x8xf32>
      %132 = tpu.matmul %130, %131, %cst_38 {dimension_numbers = #tpu.dot_dimension_numbers<[1], [0], [0], [1], [0, 0, 1, 1], [], []>} : vector<24x24xbf16>, vector<24x8xbf16>, vector<24x8xf32> -> vector<24x8xf32>
      %133 = arith.addf %129, %132 : vector<24x8xf32>
      %134 = tpu.concatenate %38, %64, %90, %116 in 1 : vector<24x1xf32>, vector<24x1xf32>, vector<24x1xf32>, vector<24x1xf32> -> vector<24x4xf32>
      %c0_39 = arith.constant 0 : index
      %c0_40 = arith.constant 0 : index
      %135 = vector.load %arg16[%c0_39, %c0_40] : memref<24x4xf32, #tpu.memory_space<vmem>>, vector<24x4xf32>
      tpu.vector_store %arg16[%c0_39, %c0_40], %134 {strides = array<i32>} : memref<24x4xf32, #tpu.memory_space<vmem>>, vector<24x4xf32>,
      %136 = tpu.concatenate %48, %74, %100, %126 in 1 : vector<24x1xf32>, vector<24x1xf32>, vector<24x1xf32>, vector<24x1xf32> -> vector<24x4xf32>
      %c0_41 = arith.constant 0 : index
      %c0_42 = arith.constant 0 : index
      %137 = vector.load %arg17[%c0_41, %c0_42] : memref<24x4xf32, #tpu.memory_space<vmem>>, vector<24x4xf32>
      tpu.vector_store %arg17[%c0_41, %c0_42], %136 {strides = array<i32>} : memref<24x4xf32, #tpu.memory_space<vmem>>, vector<24x4xf32>,
      %138 = tpu.concatenate %55, %81, %107, %133 in 1 : vector<24x8xf32>, vector<24x8xf32>, vector<24x8xf32>, vector<24x8xf32> -> vector<24x32xf32>
      %c0_43 = arith.constant 0 : index
      %c0_44 = arith.constant 0 : index
      %139 = vector.load %arg18[%c0_43, %c0_44] : memref<24x32xf32, #tpu.memory_space<vmem>>, vector<24x32xf32>
      tpu.vector_store %arg18[%c0_43, %c0_44], %138 {strides = array<i32>} : memref<24x32xf32, #tpu.memory_space<vmem>>, vector<24x32xf32>,
    } else {
    }
    %c0_i32_2 = arith.constant 0 : i32
    %6 = arith.cmpi eq, %arg1, %c0_i32_2 : i32
    %7 = arith.extui %6 : i1 to i32
    %c0_i32_3 = arith.constant 0 : i32
    %8 = arith.cmpi ne, %7, %c0_i32_3 : i32
    scf.if %8 {
      %c0 = arith.constant 0 : index
      %c0_4 = arith.constant 0 : index
      %9 = vector.load %arg17[%c0, %c0_4] : memref<24x4xf32, #tpu.memory_space<vmem>>, vector<24x4xf32>
      %cst = arith.constant 1.000000e-30 : f32
      %10 = vector.broadcast %cst : f32 to vector<24x4xf32>
      %11 = arith.maximumf %9, %10 : vector<24x4xf32>
      %c0_5 = arith.constant 0 : index
      %c0_6 = arith.constant 0 : index
      %12 = vector.load %arg18[%c0_5, %c0_6] : memref<24x32xf32, #tpu.memory_space<vmem>>, vector<24x32xf32>
      %c0_7 = arith.constant 0 : index
      %c0_8 = arith.constant 0 : index
      %13 = vector.load %arg8[%c0_7, %c0_8] : memref<32x32xbf16, #tpu.memory_space<vmem>>, vector<32x32xbf16>
      %cst_9 = arith.constant 0.000000e+00 : f32
      %14 = vector.broadcast %cst_9 : f32 to vector<24x32xf32>
      %15 = vector.extract_strided_slice %12 {offsets = [0, 0], sizes = [24, 8], strides = [1, 1]} : vector<24x32xf32> to vector<24x8xf32>
      %16 = vector.extract_strided_slice %11 {offsets = [0, 0], sizes = [24, 1], strides = [1, 1]} : vector<24x4xf32> to vector<24x1xf32>
      %17 = vector.broadcast %16 : vector<24x1xf32> to vector<24x8xf32>
      %18 = arith.divf %15, %17 : vector<24x8xf32>
      %19 = arith.truncf %18 : vector<24x8xf32> to vector<24x8xbf16>
      %20 = vector.extract_strided_slice %13 {offsets = [0, 0], sizes = [8, 32], strides = [1, 1]} : vector<32x32xbf16> to vector<8x32xbf16>
      %cst_10 = arith.constant dense<0.000000e+00> : vector<24x32xf32>
      %21 = tpu.matmul %19, %20, %cst_10 {dimension_numbers = #tpu.dot_dimension_numbers<[1], [0], [0], [1], [0, 0, 1, 1], [], []>} : vector<24x8xbf16>, vector<8x32xbf16>, vector<24x32xf32> -> vector<24x32xf32>
      %22 = arith.addf %14, %21 : vector<24x32xf32>
      %23 = vector.extract_strided_slice %12 {offsets = [0, 8], sizes = [24, 8], strides = [1, 1]} : vector<24x32xf32> to vector<24x8xf32>
      %24 = vector.extract_strided_slice %11 {offsets = [0, 1], sizes = [24, 1], strides = [1, 1]} : vector<24x4xf32> to vector<24x1xf32>
      %25 = vector.broadcast %24 : vector<24x1xf32> to vector<24x8xf32>
      %26 = arith.divf %23, %25 : vector<24x8xf32>
      %27 = arith.truncf %26 : vector<24x8xf32> to vector<24x8xbf16>
      %28 = vector.extract_strided_slice %13 {offsets = [8, 0], sizes = [8, 32], strides = [1, 1]} : vector<32x32xbf16> to vector<8x32xbf16>
      %cst_11 = arith.constant dense<0.000000e+00> : vector<24x32xf32>
      %29 = tpu.matmul %27, %28, %cst_11 {dimension_numbers = #tpu.dot_dimension_numbers<[1], [0], [0], [1], [0, 0, 1, 1], [], []>} : vector<24x8xbf16>, vector<8x32xbf16>, vector<24x32xf32> -> vector<24x32xf32>
      %30 = arith.addf %22, %29 : vector<24x32xf32>
      %31 = vector.extract_strided_slice %12 {offsets = [0, 16], sizes = [24, 8], strides = [1, 1]} : vector<24x32xf32> to vector<24x8xf32>
      %32 = vector.extract_strided_slice %11 {offsets = [0, 2], sizes = [24, 1], strides = [1, 1]} : vector<24x4xf32> to vector<24x1xf32>
      %33 = vector.broadcast %32 : vector<24x1xf32> to vector<24x8xf32>
      %34 = arith.divf %31, %33 : vector<24x8xf32>
      %35 = arith.truncf %34 : vector<24x8xf32> to vector<24x8xbf16>
      %36 = vector.extract_strided_slice %13 {offsets = [16, 0], sizes = [8, 32], strides = [1, 1]} : vector<32x32xbf16> to vector<8x32xbf16>
      %cst_12 = arith.constant dense<0.000000e+00> : vector<24x32xf32>
      %37 = tpu.matmul %35, %36, %cst_12 {dimension_numbers = #tpu.dot_dimension_numbers<[1], [0], [0], [1], [0, 0, 1, 1], [], []>} : vector<24x8xbf16>, vector<8x32xbf16>, vector<24x32xf32> -> vector<24x32xf32>
      %38 = arith.addf %30, %37 : vector<24x32xf32>
      %39 = vector.extract_strided_slice %12 {offsets = [0, 24], sizes = [24, 8], strides = [1, 1]} : vector<24x32xf32> to vector<24x8xf32>
      %40 = vector.extract_strided_slice %11 {offsets = [0, 3], sizes = [24, 1], strides = [1, 1]} : vector<24x4xf32> to vector<24x1xf32>
      %41 = vector.broadcast %40 : vector<24x1xf32> to vector<24x8xf32>
      %42 = arith.divf %39, %41 : vector<24x8xf32>
      %43 = arith.truncf %42 : vector<24x8xf32> to vector<24x8xbf16>
      %44 = vector.extract_strided_slice %13 {offsets = [24, 0], sizes = [8, 32], strides = [1, 1]} : vector<32x32xbf16> to vector<8x32xbf16>
      %cst_13 = arith.constant dense<0.000000e+00> : vector<24x32xf32>
      %45 = tpu.matmul %43, %44, %cst_13 {dimension_numbers = #tpu.dot_dimension_numbers<[1], [0], [0], [1], [0, 0, 1, 1], [], []>} : vector<24x8xbf16>, vector<8x32xbf16>, vector<24x32xf32> -> vector<24x32xf32>
      %46 = arith.addf %38, %45 : vector<24x32xf32>
      %c0_14 = arith.constant 0 : index
      %c0_15 = arith.constant 0 : index
      %47 = vector.load %arg5[%c0_14, %c0_15] : memref<24x32xf32, #tpu.memory_space<vmem>>, vector<24x32xf32>
      %48 = arith.addf %46, %47 : vector<24x32xf32>
      %49 = arith.mulf %48, %48 : vector<24x32xf32>
      %cst_16 = arith.constant dense<0.000000e+00> : vector<24xf32>
      %50 = vector.multi_reduction <add>, %49, %cst_16 [1] : vector<24x32xf32> to vector<24xf32>
      %51 = vector.shape_cast %50 : vector<24xf32> to vector<24x1xf32>
      %cst_17 = arith.constant 3.200000e+01 : f32
      %52 = vector.broadcast %cst_17 : f32 to vector<24x1xf32>
      %53 = arith.divf %51, %52 : vector<24x1xf32>
      %cst_18 = arith.constant 9.99999974E-6 : f32
      %54 = vector.broadcast %cst_18 : f32 to vector<24x1xf32>
      %55 = arith.addf %53, %54 : vector<24x1xf32>
      %56 = math.rsqrt %55 : vector<24x1xf32>
      %57 = vector.broadcast %56 : vector<24x1xf32> to vector<24x32xf32>
      %58 = arith.mulf %48, %57 : vector<24x32xf32>
      %c0_19 = arith.constant 0 : index
      %c0_20 = arith.constant 0 : index
      %59 = vector.load %arg9[%c0_19, %c0_20] : memref<1x32xf32, #tpu.memory_space<vmem>>, vector<1x32xf32>
      %60 = vector.broadcast %59 : vector<1x32xf32> to vector<24x32xf32>
      %61 = arith.mulf %58, %60 : vector<24x32xf32>
      %62 = arith.truncf %61 : vector<24x32xf32> to vector<24x32xbf16>
      %c0_21 = arith.constant 0 : index
      %c0_22 = arith.constant 0 : index
      %63 = vector.load %arg11[%c0_21, %c0_22] : memref<32x64xbf16, #tpu.memory_space<vmem>>, vector<32x64xbf16>
      %cst_23 = arith.constant dense<0.000000e+00> : vector<24x64xf32>
      %64 = tpu.matmul %62, %63, %cst_23 {dimension_numbers = #tpu.dot_dimension_numbers<[1], [0], [0], [1], [0, 0, 1, 1], [], []>} : vector<24x32xbf16>, vector<32x64xbf16>, vector<24x64xf32> -> vector<24x64xf32>
      %c0_24 = arith.constant 0 : index
      %c0_25 = arith.constant 0 : index
      %65 = vector.load %arg12[%c0_24, %c0_25] : memref<32x64xbf16, #tpu.memory_space<vmem>>, vector<32x64xbf16>
      %cst_26 = arith.constant dense<0.000000e+00> : vector<24x64xf32>
      %66 = tpu.matmul %62, %65, %cst_26 {dimension_numbers = #tpu.dot_dimension_numbers<[1], [0], [0], [1], [0, 0, 1, 1], [], []>} : vector<24x32xbf16>, vector<32x64xbf16>, vector<24x64xf32> -> vector<24x64xf32>
      %67 = arith.mulf %64, %66 : vector<24x64xf32>
      %68 = arith.negf %66 : vector<24x64xf32>
      %69 = math.exp %68 : vector<24x64xf32>
      %cst_27 = arith.constant 1.000000e+00 : f32
      %70 = vector.broadcast %cst_27 : f32 to vector<24x64xf32>
      %71 = arith.addf %70, %69 : vector<24x64xf32>
      %72 = arith.divf %70, %71 : vector<24x64xf32>
      %73 = arith.mulf %67, %72 : vector<24x64xf32>
      %74 = arith.truncf %73 : vector<24x64xf32> to vector<24x64xbf16>
      %c0_28 = arith.constant 0 : index
      %c0_29 = arith.constant 0 : index
      %75 = vector.load %arg13[%c0_28, %c0_29] : memref<64x32xbf16, #tpu.memory_space<vmem>>, vector<64x32xbf16>
      %cst_30 = arith.constant dense<0.000000e+00> : vector<24x32xf32>
      %76 = tpu.matmul %74, %75, %cst_30 {dimension_numbers = #tpu.dot_dimension_numbers<[1], [0], [0], [1], [0, 0, 1, 1], [], []>} : vector<24x64xbf16>, vector<64x32xbf16>, vector<24x32xf32> -> vector<24x32xf32>
      %77 = arith.addf %76, %48 : vector<24x32xf32>
      %78 = arith.mulf %77, %77 : vector<24x32xf32>
      %cst_31 = arith.constant dense<0.000000e+00> : vector<24xf32>
      %79 = vector.multi_reduction <add>, %78, %cst_31 [1] : vector<24x32xf32> to vector<24xf32>
      %80 = vector.shape_cast %79 : vector<24xf32> to vector<24x1xf32>
      %cst_32 = arith.constant 3.200000e+01 : f32
      %81 = vector.broadcast %cst_32 : f32 to vector<24x1xf32>
      %82 = arith.divf %80, %81 : vector<24x1xf32>
      %cst_33 = arith.constant 9.99999974E-6 : f32
      %83 = vector.broadcast %cst_33 : f32 to vector<24x1xf32>
      %84 = arith.addf %82, %83 : vector<24x1xf32>
      %85 = math.rsqrt %84 : vector<24x1xf32>
      %86 = vector.broadcast %85 : vector<24x1xf32> to vector<24x32xf32>
      %87 = arith.mulf %77, %86 : vector<24x32xf32>
      %c0_34 = arith.constant 0 : index
      %c0_35 = arith.constant 0 : index
      %88 = vector.load %arg10[%c0_34, %c0_35] : memref<1x32xf32, #tpu.memory_space<vmem>>, vector<1x32xf32>
      %89 = vector.broadcast %88 : vector<1x32xf32> to vector<24x32xf32>
      %90 = arith.mulf %87, %89 : vector<24x32xf32>
      %c0_36 = arith.constant 0 : index
      %c0_37 = arith.constant 0 : index
      %91 = vector.load %arg14[%c0_36, %c0_37] : memref<24x32xf32, #tpu.memory_space<vmem>>, vector<24x32xf32>
      tpu.vector_store %arg14[%c0_36, %c0_37], %90 {strides = array<i32>} : memref<24x32xf32, #tpu.memory_space<vmem>>, vector<24x32xf32>,
      %c0_38 = arith.constant 0 : index
      %c0_39 = arith.constant 0 : index
      %92 = vector.load %arg15[%c0_38, %c0_39] : memref<24x32xf32, #tpu.memory_space<vmem>>, vector<24x32xf32>
      tpu.vector_store %arg15[%c0_38, %c0_39], %48 {strides = array<i32>} : memref<24x32xf32, #tpu.memory_space<vmem>>, vector<24x32xf32>,
    } else {
    }
    return
  }
  func.func @transform_0(%arg0: i32, %arg1: i32) -> (i32, i32) {
    %c0_i32 = arith.constant 0 : i32
    %c0_i32_0 = arith.constant 0 : i32
    return %arg0, %c0_i32 : i32, i32
  }
  func.func @transform_1(%arg0: i32, %arg1: i32) -> (i32, i32) {
    %c0_i32 = arith.constant 0 : i32
    %c0_i32_0 = arith.constant 0 : i32
    return %arg1, %c0_i32 : i32, i32
  }
  func.func @transform_2(%arg0: i32, %arg1: i32) -> (i32, i32) {
    %c0_i32 = arith.constant 0 : i32
    %c0_i32_0 = arith.constant 0 : i32
    return %arg1, %c0_i32 : i32, i32
  }
  func.func @transform_3(%arg0: i32, %arg1: i32) -> (i32, i32) {
    %c0_i32 = arith.constant 0 : i32
    %c0_i32_0 = arith.constant 0 : i32
    return %arg0, %c0_i32 : i32, i32
  }
  func.func @transform_4(%arg0: i32, %arg1: i32) -> (i32, i32) {
    %c0_i32 = arith.constant 0 : i32
    %c0_i32_0 = arith.constant 0 : i32
    return %arg0, %c0_i32 : i32, i32
  }
  func.func @transform_5(%arg0: i32, %arg1: i32) -> (i32, i32) {
    %c0_i32 = arith.constant 0 : i32
    %c0_i32_0 = arith.constant 0 : i32
    return %c0_i32, %arg1 : i32, i32
  }
  func.func @transform_6(%arg0: i32, %arg1: i32) -> (i32, i32) {
    %c0_i32 = arith.constant 0 : i32
    %c0_i32_0 = arith.constant 0 : i32
    %c0_i32_1 = arith.constant 0 : i32
    return %c0_i32, %c0_i32_0 : i32, i32
  }
  func.func @transform_7(%arg0: i32, %arg1: i32) -> (i32, i32) {
    %c0_i32 = arith.constant 0 : i32
    %c0_i32_0 = arith.constant 0 : i32
    %c0_i32_1 = arith.constant 0 : i32
    return %c0_i32, %c0_i32_0 : i32, i32
  }
  func.func @transform_8(%arg0: i32, %arg1: i32) -> (i32, i32) {
    %c0_i32 = arith.constant 0 : i32
    %c0_i32_0 = arith.constant 0 : i32
    %c0_i32_1 = arith.constant 0 : i32
    return %c0_i32, %c0_i32_0 : i32, i32
  }
  func.func @transform_9(%arg0: i32, %arg1: i32) -> (i32, i32) {
    %c0_i32 = arith.constant 0 : i32
    %c0_i32_0 = arith.constant 0 : i32
    %c0_i32_1 = arith.constant 0 : i32
    return %c0_i32, %c0_i32_0 : i32, i32
  }
  func.func @transform_10(%arg0: i32, %arg1: i32) -> (i32, i32) {
    %c0_i32 = arith.constant 0 : i32
    %c0_i32_0 = arith.constant 0 : i32
    %c0_i32_1 = arith.constant 0 : i32
    return %c0_i32, %c0_i32_0 : i32, i32
  }
  func.func @transform_11(%arg0: i32, %arg1: i32) -> (i32, i32) {
    %c0_i32 = arith.constant 0 : i32
    %c0_i32_0 = arith.constant 0 : i32
    %c0_i32_1 = arith.constant 0 : i32
    return %c0_i32, %c0_i32_0 : i32, i32
  }
  func.func @transform_12(%arg0: i32, %arg1: i32) -> (i32, i32) {
    %c0_i32 = arith.constant 0 : i32
    %c0_i32_0 = arith.constant 0 : i32
    return %arg0, %c0_i32 : i32, i32
  }
  func.func @transform_13(%arg0: i32, %arg1: i32) -> (i32, i32) {
    %c0_i32 = arith.constant 0 : i32
    %c0_i32_0 = arith.constant 0 : i32
    return %arg0, %c0_i32 : i32, i32
  }
}

</mosaic_0001>

<bundles_post_ra>
// kernel: _isotropic_jit.2
= control target key start
LH: loop header
LB: loop body
LE: loop exit
PB: predicated region body
PF: predicated region fallthrough
CT: control target
= control target key end

     0   :  { %vm52_vm0 = vcmask 261120   ;;  %vm377_vm1 = vcmask 257024   ;;  %s820_s0 = inlined_call_operand.vmem [shape: f32[24,32], index: 0, kind: input, shape index: {}]   ;;  %s821_s1 = inlined_call_operand.vmem [shape: f32[24,32], index: 1, kind: input, shape index: {}]   ;;  %s822_s13 = inlined_call_operand.vmem [shape: f32[24,32], index: 13, kind: output, shape index: {3}]   ;;  %s823_s5 = inlined_call_operand.vmem [shape: bf16[32,32], index: 5, kind: input, shape index: {}]   ;;  %s824_s6 = inlined_call_operand.vmem [shape: bf16[32,32], index: 6, kind: input, shape index: {}]   ;;  %s825_s7 = inlined_call_operand.vmem [shape: bf16[32,32], index: 7, kind: input, shape index: {}]   ;;  %s826_s8 = inlined_call_operand.vmem [shape: bf16[32,32], index: 8, kind: input, shape index: {}]   ;;  %s827_s9 = inlined_call_operand.vmem [shape: bf16[32,32], index: 9, kind: input, shape index: {}]   ;;  %s828_s4 = inlined_call_operand.vmem [shape: f32[1,32], index: 4, kind: input, shape index: {}]   ;;  %s829_s2 = inlined_call_operand.vmem [shape: f32[24,32], index: 2, kind: input, shape index: {}]   ;;  %s830_s3 = inlined_call_operand.vmem [shape: f32[24,32], index: 3, kind: input, shape index: {}]   ;;  %s831_s10 = inlined_call_operand.vmem [shape: bf16[24,32], index: 10, kind: output, shape index: {0}]   ;;  %s832_s11 = inlined_call_operand.vmem [shape: bf16[24,32], index: 11, kind: output, shape index: {1}]   ;;  %s833_s12 = inlined_call_operand.vmem [shape: bf16[24,32], index: 12, kind: output, shape index: {2}]  }
   0x1   :  { %v40_v0 = vld [vmem:[%s820_s0] sm:$0xff]  ;;  %v41_v2 = vld [vmem:[%s820_s0 + $0x8] sm:$0xff]  ;;  %v42_v5 = vld [vmem:[%s820_s0 + $0x10] sm:$0xff] }
   0x2   :  { %v43_v1 = vld [vmem:[%s821_s1] sm:$0xff]  ;;  %v44_v4 = vld [vmem:[%s821_s1 + $0x8] sm:$0xff]  ;;  %v45_v6 = vld [vmem:[%s821_s1 + $0x10] sm:$0xff] }
   0x3   :  { %v46_v3 = vadd.f32 %v43_v1, %v40_v0  ;;  %v47_v7 = vadd.f32 %v44_v4, %v41_v2  ;;  %v48_v8 = vadd.f32 %v45_v6, %v42_v5  ;;  %v604_v15 = vld [vmem:[%s823_s5 + $0x8] sm:$0xff]   ;;  %v606_v17 = vld [vmem:[%s823_s5] sm:$0xff]   ;;  %v89_v46 = vld [vmem:[%s829_s2 + $0x10] sm:$0xff] }
   0x4   :  { %v605_v16 = vld [vmem:[%s824_s6 + $0x8] sm:$0xff]   ;;  %564 = vmatprep.subr.bf16.mxu0 %v604_v15  ;;  %v607_v18 = vld [vmem:[%s824_s6] sm:$0xff]   ;;  %v92_v47 = vld [vmem:[%s830_s3 + $0x10] sm:$0xff] }
   0x5   :  { %v49_v9 = vmul.f32 %v46_v3, %v46_v3  ;;  %486 = vst.msk [vmem:[%s822_s13] sm:$0xff] %vm52_vm0, %v46_v3  ;;  %v50_v10 = vmul.f32 %v47_v7, %v47_v7  ;;  %487 = vst.msk [vmem:[%s822_s13 + $0x8] sm:$0xff] %vm52_vm0, %v47_v7  ;;  %v51_v11 = vmul.f32 %v48_v8, %v48_v8  ;;  %565 = vmatpush3.bf16.msra.mxu0 %v604_v15  ;;  %v608_v19 = vld [vmem:[%s825_s7 + $0x8] sm:$0xff]   ;;  %v505_v34 = vld [vmem:[%s828_s4] ss:$0 sm:$0xff] }
   0x6   :  { %488 = vst.msk [vmem:[%s822_s13 + $0x10] sm:$0xff] %vm52_vm0, %v48_v8  ;;  %572 = vmatprep.subr.bf16.mxu1 %v605_v16  ;;  %566 = vmatprep.subr.bf16.mxu0 %v606_v17  ;;  %v609_v20 = vld [vmem:[%s826_s8 + $0x8] sm:$0xff]   ;;  %v610_v42 = vld [vmem:[%s825_s7] sm:$0xff]  }
   0x7   :  { %v53_v12 = vsel %vm52_vm0, %v49_v9, 0.0  ;;  %v59_v13 = vsel %vm52_vm0, %v51_v11, 0.0  ;;  %v56_v14 = vsel %vm52_vm0, %v50_v10, 0.0  ;;  %573 = vmatpush3.bf16.msra.mxu1 %v605_v16  ;;  %v611_v43 = vld [vmem:[%s826_s8] sm:$0xff]   ;;  %v612_v44 = vld [vmem:[%s827_s9 + $0x8] sm:$0xff]  }
   0x8   :  { %54 = vadd.xlane.f32.xlu0 %v53_v12  ;;  %60 = vadd.xlane.f32.xlu1 %v59_v13  ;;  %v613_v45 = vld [vmem:[%s827_s9] sm:$0xff]   ;;  %v88_v61 = vld [vmem:[%s829_s2 + $0x8] sm:$0xff] }
   0x9   :  { %574 = vmatprep.subr.bf16.mxu1 %v607_v18  ;;  %567 = vmatpush3.bf16.msra.mxu0 %v606_v17  ;;  %v87_v50 = vld [vmem:[%s829_s2] sm:$0xff]  ;;  %v91_v62 = vld [vmem:[%s830_s3 + $0x8] sm:$0xff] }
   0xa   :  { %580 = vmatprep.subr.bf16.mxu0 %v608_v19  ;;  %v90_v51 = vld [vmem:[%s830_s3] sm:$0xff] }
   0xb   :  { %575 = vmatpush3.bf16.msra.mxu1 %v607_v18 }
   0xc   :  { %57 = vadd.xlane.f32.xlu0 %v56_v14  ;;  %588 = vmatprep.subr.bf16.mxu1 %v609_v20 }
  0x91   :  { %v55_v21 = vpop.xlane.xlu0 %54  ;;  %v61_v23 = vpop.xlane.xlu1 %60 }
  0x92   :  { %v63_v22 = vmul.f32 0.03125, %v55_v21  ;;  %v65_v24 = vmul.f32 0.03125, %v61_v23 }
  0x94   :  { %v66_v25 = vadd.f32 1e-05, %v63_v22  ;;  %v68_v27 = vadd.f32 1e-05, %v65_v24 }
  0x95   :  { %v58_v26 = vpop.xlane.xlu0 %57 }
  0x96   :  { %614 = vrsqrt.f32 %v66_v25  ;;  %v64_v28 = vmul.f32 0.03125, %v58_v26 }
  0x97   :  { %616 = vrsqrt.f32 %v68_v27 }
  0x98   :  { %v67_v29 = vadd.f32 1e-05, %v64_v28 }
  0x9a   :  { %618 = vrsqrt.f32 %v67_v29 }
  0xa3   :  { %v615_v30 = vpop.eup %614 }
  0xa4   :  { %v617_v31 = vpop.eup %616  ;;  %v72_v33 = vmul.f32 %v615_v30, %v46_v3 }
  0xa5   :  { %v74_v32 = vmul.f32 %v617_v31, %v48_v8 }
  0xa6   :  { %v82_v38 = vmul.f32 %v505_v34, %v72_v33 }
  0xa7   :  { %v619_v35 = vpop.eup %618  ;;  %v84_v36 = vmul.f32 %v505_v34, %v74_v32 }
  0xa8   :  { %v73_v37 = vmul.f32 %v619_v35, %v47_v7 }
  0xa9   :  { %v86_v40 = vpack.c.bf16 %v84_v36, %v84_v36 }
  0xaa   :  { %v83_v39 = vmul.f32 %v505_v34, %v73_v37 }
  0xac   :  { %v85_v41 = vpack.c.bf16 %v83_v39, %v82_v38 }
  0xae   :  { %568 = vmatprep.mubr.msk.bf16.mxu0 %vm52_vm0, %v85_v41  ;;  %576 = vmatprep.mubr.msk.bf16.mxu1 %vm52_vm0, %v85_v41 }
  0xaf   :  { %569 = vmatmul.mubr.msk.bf16.vlgmr.msra.gmra.mxu0 %vm52_vm0, %v86_v40  ;;  %577 = vmatmul.mubr.msk.bf16.vlgmr.msra.gmra.mxu1 %vm52_vm0, %v86_v40 }
  0xb0   :  { %581 = vmatpush3.bf16.msra.mxu0 %v608_v19  ;;  %584 = vmatprep.mubr.msk.bf16.mxu0 %vm52_vm0, %v85_v41 }
  0xb1   :  { %589 = vmatpush3.bf16.msra.mxu1 %v609_v20  ;;  %592 = vmatprep.mubr.msk.bf16.mxu1 %vm52_vm0, %v85_v41 }
  0xb2   :  { %582 = vmatprep.subr.bf16.mxu0 %v610_v42  ;;  %590 = vmatprep.subr.bf16.mxu1 %v611_v43 }
  0xb4   :  { %583 = vmatpush3.bf16.msra.mxu0 %v610_v42 }
  0xb5   :  { %591 = vmatpush3.bf16.msra.mxu1 %v611_v43  ;;  %596 = vmatprep.subr.bf16.mxu0 %v612_v44 }
  0xb7   :  { %585 = vmatmul.mubr.msk.bf16.vlgmr.msra.gmra.mxu0 %vm52_vm0, %v86_v40 }
  0xb8   :  { %593 = vmatmul.mubr.msk.bf16.vlgmr.msra.gmra.mxu1 %vm52_vm0, %v86_v40  ;;  %597 = vmatpush3.bf16.msra.mxu0 %v612_v44 }
  0xb9   :  { %600 = vmatprep.mubr.msk.bf16.mxu0 %vm52_vm0, %v85_v41  ;;  %598 = vmatprep.subr.bf16.mxu0 %v613_v45 }
  0xbc   :  { %599 = vmatpush3.bf16.msra.mxu0 %v613_v45 }
  0xbf   :  { %601 = vmatmul.mubr.msk.bf16.vlgmr.msra.gmra.mxu0 %vm52_vm0, %v86_v40 }
 0x16f   :  { %v570_v48 = vpop.f32.mrf.mxu0  ;;  %v578_v49 = vpop.f32.mrf.mxu1 }
 0x170   :  { %v357_v52 = vmul.f32 %v570_v48, %v89_v46  ;;  %v360_v53 = vmul.f32 %v578_v49, %v92_v47 }
 0x171   :  { %v149_v54 = vpop.f32.mrf.mxu0  ;;  %v213_v55 = vpop.f32.mrf.mxu1 }
 0x172   :  { %v363_v56 = vadd.f32 %v360_v53, %v357_v52  ;;  %v355_v57 = vmul.f32 %v149_v54, %v87_v50  ;;  %v358_v58 = vmul.f32 %v213_v55, %v90_v51 }
 0x173   :  { %v571_v59 = vpop.f32.mrf.mxu0  ;;  %v579_v60 = vpop.f32.mrf.mxu1 }
 0x174   :  { %v537_v63 = vpack.c.bf16 %v363_v56, %v363_v56  ;;  %v361_v0 = vadd.f32 %v358_v58, %v355_v57 }
 0x175   :  { %v152_v1 = vpop.f32.mrf.mxu0  ;;  %v216_v2 = vpop.f32.mrf.mxu1 }
 0x176   :  { %380 = vst.msk [vmem:[%s831_s10 + $0x8] sm:$0xf] %vm377_vm1, %v537_v63  ;;  %v535_v3 = vpack.c.bf16 %v361_v0, %v361_v0  ;;  %v356_v4 = vmul.f32 %v152_v1, %v88_v61  ;;  %v359_v5 = vmul.f32 %v216_v2, %v91_v62 }
 0x177   :  { %v586_v6 = vpop.f32.mrf.mxu0 }
 0x178   :  { %378 = vst.msk [vmem:[%s831_s10] sm:$0xf] %vm377_vm1, %v535_v3  ;;  %v362_v7 = vadd.f32 %v359_v5, %v356_v4  ;;  %v383_v8 = vmul.f32 %v586_v6, %v89_v46  ;;  %v594_v9 = vpop.f32.mrf.mxu1 }
 0x179   :  { %v386_v10 = vmul.f32 %v594_v9, %v92_v47  ;;  %v277_v11 = vpop.f32.mrf.mxu0 }
 0x17a   :  { %v536_v12 = vpack.c.bf16 %v362_v7, %v362_v7  ;;  %v381_v13 = vmul.f32 %v277_v11, %v87_v50  ;;  %v341_v14 = vpop.f32.mrf.mxu1 }
 0x17b   :  { %v389_v15 = vadd.f32 %v386_v10, %v383_v8  ;;  %v384_v16 = vmul.f32 %v341_v14, %v90_v51  ;;  %v587_v17 = vpop.f32.mrf.mxu0 }
 0x17c   :  { %379 = vst.msk [vmem:[%s831_s10 + $0x4] sm:$0xf] %vm377_vm1, %v536_v12  ;;  %v595_v18 = vpop.f32.mrf.mxu1 }
 0x17d   :  { %v540_v19 = vpack.c.bf16 %v389_v15, %v389_v15  ;;  %v387_v20 = vadd.f32 %v384_v16, %v381_v13  ;;  %v280_v21 = vpop.f32.mrf.mxu0 }
 0x17e   :  { %v382_v22 = vmul.f32 %v280_v21, %v88_v61  ;;  %v344_v23 = vpop.f32.mrf.mxu1 }
 0x17f   :  { %405 = vst.msk [vmem:[%s832_s11 + $0x8] sm:$0xf] %vm377_vm1, %v540_v19  ;;  %v538_v24 = vpack.c.bf16 %v387_v20, %v387_v20  ;;  %v385_v25 = vmul.f32 %v344_v23, %v91_v62  ;;  %v602_v26 = vpop.f32.mrf.mxu0 }
 0x180   :  { %v543_v27 = vpack.c.bf16 %v602_v26, %v602_v26 }
 0x181   :  { %403 = vst.msk [vmem:[%s832_s11] sm:$0xf] %vm377_vm1, %v538_v24  ;;  %v388_v28 = vadd.f32 %v385_v25, %v382_v22  ;;  %v456_v29 = vpop.f32.mrf.mxu0 }
 0x182   :  { %485 = vst.msk [vmem:[%s833_s12 + $0x8] sm:$0xf] %vm377_vm1, %v543_v27  ;;  %v541_v30 = vpack.c.bf16 %v456_v29, %v456_v29 }
 0x183   :  { %v539_v31 = vpack.c.bf16 %v388_v28, %v388_v28  ;;  %v603_v32 = vpop.f32.mrf.mxu0 }
 0x184   :  { %483 = vst.msk [vmem:[%s833_s12] sm:$0xf] %vm377_vm1, %v541_v30 }
 0x185   :  { %404 = vst.msk [vmem:[%s832_s11 + $0x4] sm:$0xf] %vm377_vm1, %v539_v31  ;;  %v459_v33 = vpop.f32.mrf.mxu0 }
 0x186   :  { %v542_v34 = vpack.c.bf16 %v459_v33, %v459_v33 }
 0x188   :  { %484 = vst.msk [vmem:[%s833_s12 + $0x4] sm:$0xf] %vm377_vm1, %v542_v34 }

// kernel: _isotropic_jit.3
= control target key start
LH: loop header
LB: loop body
LE: loop exit
PB: predicated region body
PF: predicated region fallthrough
CT: control target
= control target key end

     0   :  { %19 = vsyncpa [#allocation6], 0  ;;  %vm139_vm0 = vcmask 64512   ;;  %v2231_v4 = vmov 0   ;;  %s2945_s0 = inlined_call_operand.vmem [shape: bf16[24,32], index: 0, kind: input, shape index: {}]   ;;  %s2946_s1 = inlined_call_operand.vmem [shape: bf16[24,32], index: 1, kind: input, shape index: {}]   ;;  %s2947_s2 = inlined_call_operand.vmem [shape: bf16[24,32], index: 2, kind: input, shape index: {}]   ;;  %s2948_s3 = inlined_call_operand.vmem [shape: f32[24,32], index: 3, kind: input, shape index: {}]   ;;  %s2949_s4 = inlined_call_operand.vmem [shape: s32[24,1], index: 4, kind: input, shape index: {}]   ;;  %s2950_s5 = inlined_call_operand.vmem [shape: s32[1,24], index: 5, kind: input, shape index: {}]   ;;  %s2951_s6 = inlined_call_operand.vmem [shape: bf16[32,32], index: 6, kind: input, shape index: {}]   ;;  %s2952_s7 = inlined_call_operand.vmem [shape: f32[1,32], index: 7, kind: input, shape index: {}]   ;;  %s2953_s8 = inlined_call_operand.vmem [shape: f32[1,32], index: 8, kind: input, shape index: {}]   ;;  %s2954_s9 = inlined_call_operand.vmem [shape: bf16[32,64], index: 9, kind: input, shape index: {}]   ;;  %s2955_s10 = inlined_call_operand.vmem [shape: bf16[32,64], index: 10, kind: input, shape index: {}]   ;;  %s2956_s11 = inlined_call_operand.vmem [shape: bf16[64,32], index: 11, kind: input, shape index: {}]   ;;  %s2957_s12 = inlined_call_operand.hbm [shape: f32[24,32], index: 12, kind: output, shape index: {0}]   ;;  %s2958_s13 = inlined_call_operand.hbm [shape: f32[24,32], index: 13, kind: output, shape index: {1}]  }
   0x1   :  { %v2319_v0 = vld [vmem:[%s2946_s1 + $0x8] ss:$0 sps:$4 sm:$0xff]   ;;  %v2324_v1 = vld [vmem:[%s2946_s1] sm:$0xff]   ;;  %2051 = vset.pattern.permute.xlu0 %v2231_v4  ;;  %v93_v6 = vld [vmem:[%s2949_s4 + $0x10] sm:$0xff]  ;;  %2052 = vset.pattern.permute.xlu1 %v2231_v4 }
   0x2   :  { %2020 = vmatprep.subr.msk.bf16.mxu0 %vm139_vm0, %v2319_v0  ;;  %v150_v2 = vsel %vm139_vm0, %v2319_v0, 0  ;;  %v2333_v3 = vld [vmem:[%s2945_s0] sm:$0xff]   ;;  %v147_v7 = vsel %vm139_vm0, %v2324_v1, 0  ;;  %v92_v8 = vld [vmem:[%s2949_s4 + $0x8] sm:$0xff]  ;;  %102 = vperm.xlu1 %2052, %v93_v6  }
   0x3   :  { %1905 = vmatpush3.bf16.xpose.msra.mxu0 %v150_v2  ;;  %v91_v5 = vld [vmem:[%s2949_s4] sm:$0xff]  ;;  %1908 = vmatprep.mubr.msk.bf16.mxu0 %vm139_vm0, %v2333_v3 }
   0x4   :  { %2021 = vmatprep.subr.msk.bf16.mxu0 %vm139_vm0, %v2324_v1  ;;  %96 = vperm.xlu0 %2051, %v91_v5  }
   0x8   :  { %99 = vperm.xlu0 %2051, %v92_v8  }
   0xb   :  { %1907 = vmatpush3.bf16.xpose.msra.mxu0 %v147_v7 }
   0xc   :  { %20 = vsyncpa [#allocation8], 0  ;;  %v2355_v9 = vld [vmem:[%s2945_s0 + $0x8] ss:$0 sps:$4 sm:$0xff]   ;;  %v74_v10 = vlaneseq  ;;  %v1796_v14 = vld [vmem:[%s2950_s5] ss:$0 sm:$0xff] }
   0xd   :  { %vm203_vm8 = vcmask 195584   ;;  %vm50_vm11 = vcmask 31744   ;;  %v2232_v29 = vmov -1e+30   ;;  %v2233_v33 = vmov 0.0   ;;  %s2234_s0 = smov 120  }
   0xe   :  { %v75_v12 = vshrl.u32 %v74_v10, 7  ;;  %v84_v13 = vand.u32 127, %v74_v10  ;;  %51 = vst.msk [vmem:[#allocation2] sm:$0xff] %vm50_vm11, %v2232_v29  ;;  %52 = vst.msk [vmem:[#allocation2 + $0x8] sm:$0xff] %vm50_vm11, %v2232_v29  ;;  %v2419_v43 = vld [vmem:[%s2947_s2 + $0x8] ss:$0 sps:$4 sm:$0xff]  }
   0xf   :  { %53 = vst.msk [vmem:[#allocation2 + $0x10] sm:$0xff] %vm50_vm11, %v2232_v29  ;;  %55 = vst.msk [vmem:[#allocation3 + $0x8] sm:$0xff] %vm50_vm11, %v2233_v33  ;;  %vm299_vm12 = vcmask 1043456   ;;  %v2424_v44 = vld [vmem:[%s2947_s2] sm:$0xff]   ;;  %s2235_s25 = smov 112   ;;  %vm1038_vm13 = vcmask 7168  }
  0x10   :  { %vm88_vm1 = vcmp.le.s32.totalorder %v84_v13, %v75_v12  ;;  %v77_v15 = vadd.s32 16, %v75_v12  ;;  %v76_v17 = vadd.s32 8, %v75_v12  ;;  %54 = vst.msk [vmem:[#allocation3] sm:$0xff] %vm50_vm11, %v2233_v33  ;;  %56 = vst.msk [vmem:[#allocation3 + $0x10] sm:$0xff] %vm50_vm11, %v2233_v33  ;;  %2022 = vmatprep.subr.msk.bf16.mxu1 %vm299_vm12, %v2419_v43  ;;  %v301_v45 = vsel %vm299_vm12, %v2419_v43, 0  ;;  %s2237_s2 = smov 104  }
  0x11   :  { %1913 = vmatpush3.bf16.msra.mxu1 %v301_v45  ;;  %vm1042_vm14 = vcmask 15360   ;;  %vm1046_vm15 = vcmask 23552   ;;  %s2240_s26 = smov 8   ;;  %s2241_s27 = smov 16  }
  0x12   :  { %1909 = vmatmul.mubr.msk.bf16.vlgmr.msra.gmra.mxu0 %vm139_vm0, %v2355_v9  ;;  %vm90_vm4 = vcmp.le.s32.totalorder %v84_v13, %v77_v15  ;;  %vm89_vm6 = vcmp.le.s32.totalorder %v84_v13, %v76_v17  ;;  %1914 = vmatprep.subr.bf16.mxu1 %v2424_v44  ;;  %s2242_s28 = smov 24  }
  0x15   :  { %v2392_v34 = vld [vmem:[#allocation2] sm:$0xff]  ;;  %v2397_v37 = vld [vmem:[#allocation2 + $0x8] sm:$0xff]  ;;  %1915 = vmatpush3.bf16.msra.mxu1 %v2424_v44 }
  0x16   :  { %v2403_v40 = vld [vmem:[#allocation2 + $0x10] sm:$0xff] }
  0x7d   :  { %v103_v16 = vpop.permute.xlu1 %102 }
  0x7e   :  { %vm110_vm5 = vcmp.eq.s32.totalorder %v103_v16, %v1796_v14 }
  0x7f   :  { %v97_v11 = vpop.permute.xlu0 %96  ;;  %vm2369_vm9 = vmand %vm90_vm4, %vm110_vm5 }
  0x80   :  { %vm108_vm2 = vcmp.eq.s32.totalorder %v97_v11, %v1796_v14 }
  0x81   :  { %vm2362_vm3 = vmand %vm88_vm1, %vm108_vm2  ;;  %vm57_vm1 = vcmask 261120   ;;  %vm1069_vm2 = vcmask 130048  }
  0x82   :  { %58 = vst.msk [vmem:[#allocation4] sm:$0xff] %vm57_vm1, %v2233_v33  ;;  %59 = vst.msk [vmem:[#allocation4 + $0x8] sm:$0xff] %vm57_vm1, %v2233_v33 }
  0x83   :  { %v100_v19 = vpop.permute.xlu0 %99  ;;  %60 = vst.msk [vmem:[#allocation4 + $0x10] sm:$0xff] %vm57_vm1, %v2233_v33 }
  0x84   :  { %vm109_vm7 = vcmp.eq.s32.totalorder %v100_v19, %v1796_v14 }
  0x85   :  { %vm2373_vm10 = vmand %vm89_vm6, %vm109_vm7 }
  0xd2   :  { %v1910_v20 = vpop.f32.mrf.mxu0 }
  0xd3   :  { %v202_v31 = vsel %vm2369_vm9, %v1910_v20, -1e+30 }
  0xd4   :  { %v186_v21 = vpop.f32.mrf.mxu0  ;;  %v210_v32 = vsel %vm203_vm8, %v202_v31, -inf }
  0xd5   :  { %v200_v22 = vsel %vm2362_vm3, %v186_v21, -1e+30 }
  0xd6   :  { %v1911_v23 = vpop.f32.mrf.mxu0  ;;  %v204_v24 = vsel %vm203_vm8, %v200_v22, -inf }
  0xd7   :  { %205 = vmax.xlane.f32.xlu1 %v204_v24 }
  0xd8   :  { %v189_v27 = vpop.f32.mrf.mxu0 }
  0xd9   :  { %v201_v28 = vsel %vm2373_vm10, %v189_v27, -1e+30 }
  0xda   :  { %v207_v30 = vsel %vm203_vm8, %v201_v28, -inf }
  0xdb   :  { %208 = vmax.xlane.f32.xlu0 %v207_v30 }
  0xdf   :  { %211 = vmax.xlane.f32.xlu0 %v210_v32 }
 0x160   :  { %v206_v35 = vpop.xlane.xlu1 %205 }
 0x161   :  { %v2395_v36 = vmax.f32 %v2392_v34, %v206_v35 }
 0x163   :  { %227 = vperm.xlu1 %2052, %v2395_v36  }
 0x164   :  { %v209_v38 = vpop.xlane.xlu0 %208 }
 0x165   :  { %v2401_v39 = vmax.f32 %v2397_v37, %v209_v38 }
 0x167   :  { %232 = vperm.xlu0 %2051, %v2401_v39  }
 0x168   :  { %v212_v41 = vpop.xlane.xlu0 %211 }
 0x169   :  { %v2407_v42 = vmax.f32 %v2403_v40, %v212_v41 }
 0x16b   :  { %237 = vperm.xlu1 %2052, %v2407_v42   ;;  %358 = vrot.lane.b32.xlu0 %v2324_v1, %s2234_s0 }
 0x16f   :  { %360 = vrot.lane.b32.xlu1 %v2319_v0, %s2234_s0  ;;  %354 = vrot.lane.b32.xlu0 %v2333_v3, %s2234_s0 }
 0x173   :  { %588 = vrot.lane.b32.xlu1 %v2319_v0, %s2235_s25  ;;  %586 = vrot.lane.b32.xlu0 %v2324_v1, %s2235_s25 }
 0x177   :  { %356 = vrot.lane.b32.xlu1 %v2355_v9, %s2234_s0  ;;  %584 = vrot.lane.b32.xlu0 %v2355_v9, %s2235_s25 }
 0x17b   :  { %582 = vrot.lane.b32.xlu1 %v2333_v3, %s2235_s25 }
 0x1de   :  { %v228_v46 = vpop.permute.xlu1 %227 }
 0x1df   :  { %v240_v47 = vsub.f32 %v200_v22, %v228_v46 }
 0x1e1   :  { %v243_v48 = vmul.f32 1.442695, %v240_v47 }
 0x1e2   :  { %v233_v49 = vpop.permute.xlu0 %232 }
 0x1e3   :  { %v241_v50 = vsub.f32 %v201_v28, %v233_v49  ;;  %2091 = vpow2.f32 %v243_v48  ;;  %v2236_v49 = vmov 1  }
 0x1e4   :  { %2053 = vset.pattern.permute.xlu0 %v2236_v49  ;;  %2054 = vset.pattern.permute.xlu1 %v2236_v49 }
 0x1e5   :  { %v245_v51 = vmul.f32 1.442695, %v241_v50 }
 0x1e6   :  { %v238_v52 = vpop.permute.xlu1 %237  ;;  %v359_v53 = vpop.permute.xlu0 %358 }
 0x1e7   :  { %2093 = vpow2.f32 %v245_v51  ;;  %v242_v54 = vsub.f32 %v202_v31, %v238_v52  ;;  %v369_v12 = vsel %vm139_vm0, %v359_v53, 0 }
 0x1e9   :  { %v247_v55 = vmul.f32 1.442695, %v242_v54 }
 0x1ea   :  { %v361_v56 = vpop.permute.xlu1 %360  ;;  %v355_v57 = vpop.permute.xlu0 %354 }
 0x1eb   :  { %2095 = vpow2.f32 %v247_v55  ;;  %2023 = vmatprep.subr.msk.bf16.mxu1 %vm139_vm0, %v361_v56  ;;  %v372_v10 = vsel %vm139_vm0, %v361_v56, 0 }
 0x1ee   :  { %v589_v58 = vpop.permute.xlu1 %588  ;;  %v587_v59 = vpop.permute.xlu0 %586 }
 0x1ef   :  { %2026 = vmatprep.subr.msk.bf16.mxu0 %vm139_vm0, %v589_v58  ;;  %v600_v60 = vsel %vm139_vm0, %v589_v58, 0  ;;  %v597_v2 = vsel %vm139_vm0, %v587_v59, 0 }
 0x1f0   :  { %1937 = vmatpush3.bf16.xpose.msra.mxu0 %v600_v60  ;;  %v2446_v62 = vpop.eup %2091 }
 0x1f1   :  { %2027 = vmatprep.subr.msk.bf16.mxu0 %vm139_vm0, %v587_v59 }
 0x1f2   :  { %v357_v61 = vpop.permute.xlu1 %356  ;;  %v585_v11 = vpop.permute.xlu0 %584 }
 0x1f4   :  { %v2448_v63 = vpop.eup %2093 }
 0x1f5   :  { %v282_v5 = vpack.c.bf16 %v2448_v63, %v2446_v62 }
 0x1f6   :  { %v583_v6 = vpop.permute.xlu1 %582 }
 0x1f7   :  { %1916 = vmatprep.mubr.msk.bf16.mxu1 %vm203_vm8, %v282_v5  ;;  %1940 = vmatprep.mubr.msk.bf16.mxu0 %vm139_vm0, %v583_v6 }
 0x1f8   :  { %v2455_v7 = vpop.eup %2095  ;;  %1939 = vmatpush3.bf16.xpose.msra.mxu0 %v597_v2 }
 0x1f9   :  { %v283_v8 = vpack.c.bf16 %v2455_v7, %v2455_v7 }
 0x1fb   :  { %1917 = vmatmul.mubr.msk.bf16.vlgmr.msra.gmra.mxu1 %vm203_vm8, %v283_v8 }
 0x1fc   :  { %1921 = vmatpush3.bf16.xpose.msra.mxu1 %v372_v10  ;;  %1924 = vmatprep.mubr.msk.bf16.mxu1 %vm139_vm0, %v355_v57 }
 0x1fd   :  { %2024 = vmatprep.subr.msk.bf16.mxu1 %vm139_vm0, %v359_v53 }
 0x1ff   :  { %1941 = vmatmul.mubr.msk.bf16.vlgmr.msra.gmra.mxu0 %vm139_vm0, %v585_v11 }
 0x204   :  { %1923 = vmatpush3.bf16.xpose.msra.mxu1 %v369_v12 }
 0x20b   :  { %1925 = vmatmul.mubr.msk.bf16.vlgmr.msra.gmra.mxu1 %vm139_vm0, %v357_v61 }
 0x2bb   :  { %v2466_v13 = vpop.f32.mrf.mxu1 }
 0x2bd   :  { %v2468_v14 = vpop.f32.mrf.mxu1 }
 0x2bf   :  { %v1919_v15 = vpop.f32.mrf.mxu1  ;;  %v1942_v16 = vpop.f32.mrf.mxu0 }
 0x2c0   :  { %v2489_v35 = vsel %vm2369_vm9, %v1942_v16, -1e+30 }
 0x2c1   :  { %v636_v17 = vpop.f32.mrf.mxu0  ;;  %v2470_v20 = vpop.f32.mrf.mxu1  ;;  %v659_v46 = vsel %vm203_vm8, %v2489_v35, -inf }
 0x2c2   :  { %v2480_v28 = vsel %vm2362_vm3, %v636_v17, -1e+30 }
 0x2c3   :  { %v1943_v19 = vpop.f32.mrf.mxu0  ;;  %v653_v32 = vsel %vm203_vm8, %v2480_v28, -inf }
 0x2c5   :  { %v639_v41 = vpop.f32.mrf.mxu0 }
 0x2c6   :  { %v651_v47 = vsel %vm2373_vm10, %v639_v41, -1e+30 }
 0x2c7   :  { %v656_v48 = vsel %vm203_vm8, %v651_v47, -inf }
 0x2cb   :  { %v1926_v21 = vpop.f32.mrf.mxu1 }
 0x2cc   :  { %v424_v38 = vsel %vm2369_vm9, %v1926_v21, -1e+30 }
 0x2cd   :  { %v408_v22 = vpop.f32.mrf.mxu1  ;;  %v431_v45 = vsel %vm203_vm8, %v424_v38, -inf }
 0x2ce   :  { %v2474_v23 = vsel %vm2362_vm3, %v408_v22, -1e+30 }
 0x2cf   :  { %v1927_v24 = vpop.f32.mrf.mxu1  ;;  %v425_v27 = vsel %vm203_vm8, %v2474_v23, -inf }
 0x2d0   :  { %426 = vmax.xlane.f32.xlu1 %v425_v27 }
 0x2d1   :  { %v411_v29 = vpop.f32.mrf.mxu1 }
 0x2d2   :  { %v423_v30 = vsel %vm2373_vm10, %v411_v29, -1e+30 }
 0x2d3   :  { %v428_v31 = vsel %vm203_vm8, %v423_v30, -inf }
 0x2d4   :  { %429 = vmax.xlane.f32.xlu0 %v428_v31  ;;  %654 = vmax.xlane.f32.xlu1 %v653_v32 }
 0x2d8   :  { %432 = vmax.xlane.f32.xlu0 %v431_v45  ;;  %660 = vmax.xlane.f32.xlu1 %v659_v46 }
 0x2dc   :  { %657 = vmax.xlane.f32.xlu0 %v656_v48 }
 0x359   :  { %v427_v50 = vpop.xlane.xlu1 %426 }
 0x35a   :  { %v2502_v51 = vmax.f32 %v2392_v34, %v427_v50 }
 0x35c   :  { %448 = vperm.xlu0 %2053, %v2502_v51   ;;  %v1039_v55 = vsel %vm1038_vm13, %v2395_v36, %v2502_v51 }
 0x35d   :  { %v430_v52 = vpop.xlane.xlu0 %429  ;;  %v655_v53 = vpop.xlane.xlu1 %654 }
 0x35e   :  { %v2506_v54 = vmax.f32 %v2392_v34, %v655_v53  ;;  %v2524_v61 = vmax.f32 %v2397_v37, %v430_v52 }
 0x360   :  { %733 = vrot.lane.b32.xlu0 %v2424_v44, %s2235_s25  ;;  %v2515_v56 = vsel %vm1042_vm14, %v1039_v55, %v2506_v54  ;;  %v1040_v10 = vsel %vm1038_vm13, %v2401_v39, %v2524_v61 }
 0x361   :  { %v433_v57 = vpop.xlane.xlu0 %432  ;;  %v661_v58 = vpop.xlane.xlu1 %660 }
 0x362   :  { %v2518_v59 = vmax.f32 %v2403_v40, %v433_v57  ;;  %v2521_v60 = vmax.f32 %v2403_v40, %v661_v58 }
 0x364   :  { %v1041_v2 = vsel %vm1038_vm13, %v2407_v42, %v2518_v59  ;;  %458 = vperm.xlu1 %2054, %v2518_v59   ;;  %814 = vrot.lane.b32.xlu0 %v2324_v1, %s2237_s2  ;;  %v2238_v1 = vmov 2  }
 0x365   :  { %v2534_v5 = vsel %vm1042_vm14, %v1041_v2, %v2521_v60  ;;  %v658_v6 = vpop.xlane.xlu0 %657 }
 0x366   :  { %v2537_v8 = vmax.f32 %v2397_v37, %v658_v6 }
 0x368   :  { %v2544_v11 = vsel %vm1042_vm14, %v1040_v10, %v2537_v8  ;;  %453 = vperm.xlu1 %2054, %v2524_v61   ;;  %812 = vrot.lane.b32.xlu0 %v2355_v9, %s2237_s2 }
 0x36c   :  { %2055 = vset.pattern.permute.xlu1 %v2238_v1 }
 0x36d   :  { %676 = vperm.xlu1 %2055, %v2506_v54  }
 0x371   :  { %681 = vperm.xlu1 %2055, %v2537_v8  }
 0x375   :  { %686 = vperm.xlu1 %2055, %v2521_v60  }
 0x379   :  { %507 = vrot.lane.b32.xlu1 %v2419_v43, %s2234_s0 }
 0x37d   :  { %505 = vrot.lane.b32.xlu1 %v2424_v44, %s2234_s0 }
 0x381   :  { %735 = vrot.lane.b32.xlu1 %v2419_v43, %s2235_s25 }
 0x385   :  { %816 = vrot.lane.b32.xlu1 %v2319_v0, %s2237_s2 }
 0x389   :  { %810 = vrot.lane.b32.xlu1 %v2333_v3, %s2237_s2 }
 0x3d7   :  { %v449_v9 = vpop.permute.xlu0 %448 }
 0x3d8   :  { %v461_v12 = vsub.f32 %v2474_v23, %v449_v9 }
 0x3da   :  { %v464_v16 = vmul.f32 1.442695, %v461_v12 }
 0x3db   :  { %v734_v53 = vpop.permute.xlu0 %733 }
 0x3dc   :  { %2097 = vpow2.f32 %v464_v16 }
 0x3df   :  { %v459_v15 = vpop.permute.xlu1 %458 }
 0x3e0   :  { %v463_v17 = vsub.f32 %v424_v38, %v459_v15  ;;  %v815_v15 = vpop.permute.xlu0 %814 }
 0x3e2   :  { %v468_v24 = vmul.f32 1.442695, %v463_v17  ;;  %v825_v17 = vsel %vm139_vm0, %v815_v15, 0 }
 0x3e3   :  { %v454_v19 = vpop.permute.xlu1 %453 }
 0x3e4   :  { %v462_v21 = vsub.f32 %v423_v30, %v454_v19  ;;  %v813_v19 = vpop.permute.xlu0 %812 }
 0x3e6   :  { %v466_v22 = vmul.f32 1.442695, %v462_v21 }
 0x3e8   :  { %2099 = vpow2.f32 %v466_v22  ;;  %v677_v27 = vpop.permute.xlu1 %676 }
 0x3e9   :  { %v689_v29 = vsub.f32 %v2480_v28, %v677_v27  ;;  %2101 = vpow2.f32 %v468_v24  ;;  %v2566_v45 = vpop.eup %2097 }
 0x3eb   :  { %v692_v0 = vmul.f32 1.442695, %v689_v29 }
 0x3ec   :  { %v682_v31 = vpop.permute.xlu1 %681 }
 0x3ed   :  { %v690_v32 = vsub.f32 %v651_v47, %v682_v31  ;;  %2103 = vpow2.f32 %v692_v0 }
 0x3ef   :  { %v694_v3 = vmul.f32 1.442695, %v690_v32 }
 0x3f0   :  { %v687_v41 = vpop.permute.xlu1 %686 }
 0x3f1   :  { %2105 = vpow2.f32 %v694_v3  ;;  %v691_v23 = vsub.f32 %v2489_v35, %v687_v41 }
 0x3f3   :  { %v696_v38 = vmul.f32 1.442695, %v691_v23 }
 0x3f4   :  { %v508_v30 = vpop.permute.xlu1 %507 }
 0x3f5   :  { %v2568_v46 = vpop.eup %2099  ;;  %2107 = vpow2.f32 %v696_v38  ;;  %v517_v48 = vsel %vm299_vm12, %v508_v30, 0  ;;  %2025 = vmatprep.subr.msk.bf16.mxu1 %vm299_vm12, %v508_v30 }
 0x3f6   :  { %1929 = vmatpush3.bf16.msra.mxu1 %v517_v48  ;;  %v503_v28 = vpack.c.bf16 %v2568_v46, %v2566_v45  ;;  %v2574_v47 = vpop.eup %2101 }
 0x3f7   :  { %v504_v50 = vpack.c.bf16 %v2574_v47, %v2574_v47 }
 0x3f8   :  { %1932 = vmatprep.mubr.msk.bf16.mxu1 %vm203_vm8, %v503_v28  ;;  %v506_v35 = vpop.permute.xlu1 %505 }
 0x3f9   :  { %1930 = vmatprep.subr.bf16.mxu1 %v506_v35 }
 0x3fa   :  { %1931 = vmatpush3.bf16.msra.mxu1 %v506_v35  ;;  %v2579_v55 = vpop.eup %2103 }
 0x3fc   :  { %v736_v52 = vpop.permute.xlu1 %735 }
 0x3fd   :  { %v745_v57 = vsel %vm299_vm12, %v736_v52, 0  ;;  %1933 = vmatmul.mubr.msk.bf16.vlgmr.msra.gmra.mxu1 %vm203_vm8, %v504_v50  ;;  %2028 = vmatprep.subr.msk.bf16.mxu1 %vm299_vm12, %v736_v52  ;;  %v2239_v52 = vmov 3  }
 0x3fe   :  { %v2584_v58 = vpop.eup %2105  ;;  %1945 = vmatpush3.bf16.msra.mxu1 %v745_v57  ;;  %2056 = vset.pattern.permute.xlu1 %v2239_v52 }
 0x3ff   :  { %1946 = vmatprep.subr.bf16.mxu1 %v734_v53  ;;  %v731_v2 = vpack.c.bf16 %v2584_v58, %v2579_v55  ;;  %2057 = vset.pattern.permute.xlu0 %v2239_v52 }
 0x400   :  { %v817_v6 = vpop.permute.xlu1 %816 }
 0x401   :  { %1948 = vmatprep.mubr.msk.bf16.mxu1 %vm203_vm8, %v731_v2  ;;  %v828_v9 = vsel %vm139_vm0, %v817_v6, 0 }
 0x402   :  { %v2589_v10 = vpop.eup %2107  ;;  %1947 = vmatpush3.bf16.msra.mxu1 %v734_v53 }
 0x403   :  { %v732_v12 = vpack.c.bf16 %v2589_v10, %v2589_v10  ;;  %2029 = vmatprep.subr.msk.bf16.mxu1 %vm139_vm0, %v817_v6 }
 0x404   :  { %v811_v16 = vpop.permute.xlu1 %810 }
 0x405   :  { %1949 = vmatmul.mubr.msk.bf16.vlgmr.msra.gmra.mxu1 %vm203_vm8, %v732_v12 }
 0x406   :  { %1953 = vmatpush3.bf16.xpose.msra.mxu1 %v828_v9  ;;  %1956 = vmatprep.mubr.msk.bf16.mxu1 %vm139_vm0, %v811_v16  ;;  %v473_v16 = vsel %vm203_vm8, %v2566_v45, 0.0  ;;  %v707_v45 = vsel %vm203_vm8, %v2589_v10, 0.0 }
 0x407   :  { %2030 = vmatprep.subr.msk.bf16.mxu1 %vm139_vm0, %v815_v15  ;;  %v704_v15 = vsel %vm203_vm8, %v2584_v58, 0.0  ;;  %v701_v58 = vsel %vm203_vm8, %v2579_v55, 0.0 }
 0x40e   :  { %1955 = vmatpush3.bf16.xpose.msra.mxu1 %v825_v17  ;;  %v437_v17 = vsub.f32 %v2392_v34, %v2502_v51  ;;  %v218_v51 = vsub.f32 %v2403_v40, %v2407_v42 }
 0x410   :  { %v223_v55 = vmul.f32 1.442695, %v218_v51 }
 0x415   :  { %1957 = vmatmul.mubr.msk.bf16.vlgmr.msra.gmra.mxu1 %vm139_vm0, %v813_v19 }
 0x4bd   :  { %v2600_v21 = vpop.f32.mrf.mxu1 }
 0x4bf   :  { %v2602_v22 = vpop.f32.mrf.mxu1 }
 0x4c1   :  { %v1935_v24 = vpop.f32.mrf.mxu1 }
 0x4c3   :  { %v2604_v27 = vpop.f32.mrf.mxu1 }
 0x4c5   :  { %v2606_v29 = vpop.f32.mrf.mxu1 }
 0x4c7   :  { %v2608_v0 = vpop.f32.mrf.mxu1 }
 0x4c9   :  { %v1951_v31 = vpop.f32.mrf.mxu1 }
 0x4cb   :  { %v2610_v32 = vpop.f32.mrf.mxu1 }
 0x4d5   :  { %v1958_v3 = vpop.f32.mrf.mxu1 }
 0x4d6   :  { %v2626_v50 = vsel %vm2369_vm9, %v1958_v3, -1e+30 }
 0x4d7   :  { %v864_v41 = vpop.f32.mrf.mxu1  ;;  %v887_v18 = vsel %vm203_vm8, %v2626_v50, -inf }
 0x4d8   :  { %v2614_v23 = vsel %vm2362_vm3, %v864_v41, -1e+30 }
 0x4d9   :  { %v1959_v38 = vpop.f32.mrf.mxu1  ;;  %v881_v30 = vsel %vm203_vm8, %v2614_v23, -inf }
 0x4da   :  { %882 = vmax.xlane.f32.xlu1 %v881_v30 }
 0x4db   :  { %v867_v48 = vpop.f32.mrf.mxu1 }
 0x4dc   :  { %v2620_v28 = vsel %vm2373_vm10, %v867_v48, -1e+30 }
 0x4dd   :  { %v884_v35 = vsel %vm203_vm8, %v2620_v28, -inf }
 0x4de   :  { %885 = vmax.xlane.f32.xlu0 %v884_v35 }
 0x4e2   :  { %888 = vmax.xlane.f32.xlu0 %v887_v18 }
 0x563   :  { %v883_v26 = vpop.xlane.xlu1 %882 }
 0x564   :  { %v2633_v53 = vmax.f32 %v2392_v34, %v883_v26 }
 0x566   :  { %v1047_v25 = vsel %vm1046_vm15, %v2515_v56, %v2633_v53  ;;  %904 = vperm.xlu1 %2056, %v2633_v53  }
 0x567   :  { %1051 = vst.msk [vmem:[#allocation2] sm:$0xff] %vm50_vm11, %v1047_v25  ;;  %v886_v57 = vpop.xlane.xlu0 %885 }
 0x568   :  { %v2641_v2 = vmax.f32 %v2397_v37, %v886_v57 }
 0x56a   :  { %v1048_v6 = vsel %vm1046_vm15, %v2544_v11, %v2641_v2  ;;  %909 = vperm.xlu0 %2057, %v2641_v2   ;;  %v255_v11 = vsel %vm203_vm8, %v2448_v63, 0.0  ;;  %v258_v63 = vsel %vm203_vm8, %v2455_v7, 0.0  ;;  %v438_v7 = vsub.f32 %v2397_v37, %v2524_v61 }
 0x56b   :  { %1052 = vst.msk [vmem:[#allocation2 + $0x8] sm:$0xff] %vm50_vm11, %v1048_v6  ;;  %v889_v9 = vpop.xlane.xlu0 %888  ;;  %v439_v61 = vsub.f32 %v2403_v40, %v2518_v59 }
 0x56c   :  { %v2649_v12 = vmax.f32 %v2403_v40, %v889_v9 }
 0x56d   :  { %v444_v19 = vmul.f32 1.442695, %v439_v61 }
 0x56e   :  { %v1049_v56 = vsel %vm1046_vm15, %v2534_v5, %v2649_v12  ;;  %914 = vperm.xlu1 %2056, %v2649_v12   ;;  %2059 = vset.pattern.permute.xlu0 %v2231_v4  ;;  %v479_v5 = vsel %vm203_vm8, %v2574_v47, 0.0  ;;  %v216_v47 = vsub.f32 %v2392_v34, %v2395_v36  ;;  %v442_v36 = vmul.f32 1.442695, %v438_v7 }
 0x56f   :  { %1053 = vst.msk [vmem:[#allocation2 + $0x10] sm:$0xff] %vm50_vm11, %v1049_v56 }
 0x572   :  { %963 = vrot.lane.b32.xlu1 %v2419_v43, %s2237_s2  ;;  %v252_v43 = vsel %vm203_vm8, %v2446_v62, 0.0  ;;  %v219_v62 = vmul.f32 1.442695, %v216_v47  ;;  %v893_v47 = vsub.f32 %v2392_v34, %v2633_v53 }
 0x573   :  { %2058 = vset.pattern.permute.xlu1 %v2231_v4 }
 0x574   :  { %2109 = vpow2.f32 %v219_v62  ;;  %v894_v62 = vsub.f32 %v2397_v37, %v2641_v2 }
 0x576   :  { %961 = vrot.lane.b32.xlu1 %v2424_v44, %s2237_s2  ;;  %v476_v44 = vsel %vm203_vm8, %v2568_v46, 0.0  ;;  %v440_v46 = vmul.f32 1.442695, %v437_v17  ;;  %v895_v17 = vsub.f32 %v2403_v40, %v2649_v12 }
 0x578   :  { %2111 = vpow2.f32 %v440_v46  ;;  %v900_v53 = vmul.f32 1.442695, %v895_v17 }
 0x579   :  { %2113 = vpow2.f32 %v442_v36 }
 0x57a   :  { %2115 = vpow2.f32 %v223_v55 }
 0x57b   :  { %2117 = vpow2.f32 %v444_v19 }
 0x581   :  { %v2696_v10 = vpop.eup %2109 }
 0x585   :  { %v2699_v24 = vpop.eup %2111 }
 0x586   :  { %v2703_v33 = vpop.eup %2113 }
 0x587   :  { %v2706_v42 = vpop.eup %2115 }
 0x588   :  { %v2710_v59 = vpop.eup %2117 }
 0x589   :  { %256 = vadd.xlane.f32.xlu0 %v255_v11  ;;  %v666_v11 = vsub.f32 %v2397_v37, %v2537_v8 }
 0x58d   :  { %480 = vadd.xlane.f32.xlu0 %v479_v5 }
 0x591   :  { %705 = vadd.xlane.f32.xlu0 %v704_v15 }
 0x59a   :  { %253 = vadd.xlane.f32.xlu1 %v252_v43 }
 0x59e   :  { %474 = vadd.xlane.f32.xlu1 %v473_v16  ;;  %v217_v16 = vsub.f32 %v2397_v37, %v2401_v39  ;;  %v667_v39 = vsub.f32 %v2403_v40, %v2521_v60 }
 0x5a0   :  { %v221_v8 = vmul.f32 1.442695, %v217_v16  ;;  %v672_v46 = vmul.f32 1.442695, %v667_v39 }
 0x5a2   :  { %477 = vadd.xlane.f32.xlu1 %v476_v44 }
 0x5a6   :  { %259 = vadd.xlane.f32.xlu1 %v258_v63 }
 0x5aa   :  { %702 = vadd.xlane.f32.xlu1 %v701_v58  ;;  %v896_v58 = vmul.f32 1.442695, %v893_v47 }
 0x5ae   :  { %708 = vadd.xlane.f32.xlu1 %v707_v45  ;;  %v898_v45 = vmul.f32 1.442695, %v894_v62 }
 0x5bf   :  { %266 = vperm.xlu1 %2058, %v2696_v10  }
 0x5c3   :  { %2060 = vset.pattern.permute.xlu1 %v2236_v49 }
 0x5c4   :  { %487 = vperm.xlu1 %2060, %v2699_v24  }
 0x5c8   :  { %492 = vperm.xlu1 %2060, %v2703_v33  }
 0x5cc   :  { %2061 = vset.pattern.permute.xlu1 %v2231_v4 }
 0x5cd   :  { %276 = vperm.xlu1 %2061, %v2706_v42  }
 0x5d1   :  { %2062 = vset.pattern.permute.xlu1 %v2236_v49 }
 0x5d2   :  { %497 = vperm.xlu1 %2062, %v2710_v59  }
 0x5d6   :  { %2063 = vset.pattern.permute.xlu1 %v2238_v1 }
 0x5e1   :  { %v905_v31 = vpop.permute.xlu1 %904 }
 0x5e2   :  { %v917_v3 = vsub.f32 %v2614_v23, %v905_v31 }
 0x5e4   :  { %v920_v41 = vmul.f32 1.442695, %v917_v3 }
 0x5e5   :  { %v910_v38 = vpop.permute.xlu0 %909 }
 0x5e6   :  { %2119 = vpow2.f32 %v920_v41  ;;  %v918_v30 = vsub.f32 %v2620_v28, %v910_v38  ;;  %v665_v28 = vsub.f32 %v2392_v34, %v2506_v54  ;;  %v670_v54 = vmul.f32 1.442695, %v666_v11  ;;  %v117_v38 = vld [vmem:[#allocation3] sm:$0xff] }
 0x5e8   :  { %v922_v48 = vmul.f32 1.442695, %v918_v30 }
 0x5e9   :  { %v915_v35 = vpop.permute.xlu1 %914 }
 0x5ea   :  { %2121 = vpow2.f32 %v922_v48  ;;  %v919_v18 = vsub.f32 %v2626_v50, %v915_v35  ;;  %v668_v50 = vmul.f32 1.442695, %v665_v28  ;;  %v249_v35 = vmul.f32 %v2696_v10, %v117_v38 }
 0x5ec   :  { %v924_v26 = vmul.f32 1.442695, %v919_v18 }
 0x5ed   :  { %v964_v25 = vpop.permute.xlu1 %963 }
 0x5ee   :  { %2123 = vpow2.f32 %v924_v26  ;;  %v973_v57 = vsel %vm299_vm12, %v964_v25, 0  ;;  %2031 = vmatprep.subr.msk.bf16.mxu0 %vm299_vm12, %v964_v25 }
 0x5ef   :  { %1961 = vmatpush3.bf16.msra.mxu0 %v973_v57  ;;  %2125 = vpow2.f32 %v668_v50 }
 0x5f0   :  { %2127 = vpow2.f32 %v670_v54 }
 0x5f1   :  { %v962_v6 = vpop.permute.xlu1 %961  ;;  %2129 = vpow2.f32 %v221_v8 }
 0x5f2   :  { %1962 = vmatprep.subr.bf16.mxu0 %v962_v6  ;;  %2131 = vpow2.f32 %v896_v58 }
 0x5f3   :  { %v2120_v23 = vpop.eup %2119  ;;  %1963 = vmatpush3.bf16.msra.mxu0 %v962_v6  ;;  %2133 = vpow2.f32 %v898_v45 }
 0x5f4   :  { %v929_v9 = vsel %vm203_vm8, %v2120_v23, 0.0  ;;  %2135 = vpow2.f32 %v672_v46 }
 0x5f5   :  { %930 = vadd.xlane.f32.xlu0 %v929_v9  ;;  %2137 = vpow2.f32 %v900_v53  ;;  %v119_v9 = vld [vmem:[#allocation3 + $0x10] sm:$0xff] }
 0x5f6   :  { %v251_v16 = vmul.f32 %v2706_v42, %v119_v9  ;;  %v472_v8 = vmul.f32 %v2710_v59, %v119_v9 }
 0x5f7   :  { %v2122_v56 = vpop.eup %2121 }
 0x5f8   :  { %v932_v5 = vsel %vm203_vm8, %v2122_v56, 0.0  ;;  %v959_v15 = vpack.c.bf16 %v2122_v56, %v2120_v23 }
 0x5f9   :  { %933 = vadd.xlane.f32.xlu1 %v932_v5 }
 0x5fa   :  { %1964 = vmatprep.mubr.msk.bf16.mxu0 %vm203_vm8, %v959_v15 }
 0x5fb   :  { %v2124_v43 = vpop.eup %2123 }
 0x5fc   :  { %v935_v44 = vsel %vm203_vm8, %v2124_v43, 0.0  ;;  %v960_v63 = vpack.c.bf16 %v2124_v43, %v2124_v43  ;;  %v2126_v34 = vpop.eup %2125 }
 0x5fd   :  { %936 = vadd.xlane.f32.xlu0 %v935_v44  ;;  %v2128_v7 = vpop.eup %2127  ;;  %v698_v48 = vmul.f32 %v2126_v34, %v117_v38 }
 0x5fe   :  { %1965 = vmatmul.mubr.msk.bf16.vlgmr.msra.gmra.mxu0 %vm203_vm8, %v960_v63  ;;  %v2130_v36 = vpop.eup %2129 }
 0x5ff   :  { %v2132_v37 = vpop.eup %2131 }
 0x600   :  { %v2134_v60 = vpop.eup %2133  ;;  %v926_v28 = vmul.f32 %v2132_v37, %v117_v38 }
 0x601   :  { %v2136_v2 = vpop.eup %2135 }
 0x602   :  { %v2138_v40 = vpop.eup %2137  ;;  %v700_v63 = vmul.f32 %v2136_v2, %v119_v9 }
 0x60a   :  { %715 = vperm.xlu1 %2063, %v2126_v34   ;;  %v928_v34 = vmul.f32 %v2138_v40, %v119_v9 }
 0x60e   :  { %720 = vperm.xlu1 %2063, %v2128_v7  }
 0x612   :  { %2065 = vset.pattern.permute.xlu1 %v2239_v52  ;;  %v257_v3 = vpop.xlane.xlu0 %256 }
 0x613   :  { %271 = vperm.xlu0 %2059, %v2130_v36   ;;  %943 = vperm.xlu1 %2065, %v2132_v37  }
 0x616   :  { %v481_v41 = vpop.xlane.xlu0 %480 }
 0x617   :  { %2064 = vset.pattern.permute.xlu0 %v2238_v1  ;;  %948 = vperm.xlu1 %2065, %v2134_v60   ;;  %v484_v17 = vadd.f32 %v481_v41, %v472_v8 }
 0x618   :  { %725 = vperm.xlu0 %2064, %v2136_v2  }
 0x61b   :  { %953 = vperm.xlu1 %2065, %v2138_v40  }
 0x61c   :  { %572 = vrot.lane.b32.xlu0 %v2604_v27, %s2240_s26 }
 0x61d   :  { %2066 = vset.pattern.permute.xlu0 %v2236_v49 }
 0x61f   :  { %570 = vrot.lane.b32.xlu1 %v2602_v22, %s2240_s26 }
 0x620   :  { %798 = vrot.lane.b32.xlu0 %v2608_v0, %s2241_s27  ;;  %2067 = vset.pattern.permute.xlu1 %v2238_v1 }
 0x623   :  { %574 = vrot.lane.b32.xlu1 %v2600_v21, %s2240_s26  ;;  %v254_v12 = vpop.xlane.xlu1 %253  ;;  %v470_v21 = vmul.f32 %v2699_v24, %v117_v38 }
 0x624   :  { %802 = vrot.lane.b32.xlu0 %v2606_v29, %s2241_s27  ;;  %v118_v29 = vld [vmem:[#allocation3 + $0x8] sm:$0xff]  ;;  %v261_v6 = vadd.f32 %v254_v12, %v249_v35 }
 0x625   :  { %v471_v26 = vmul.f32 %v2703_v33, %v118_v29  ;;  %v250_v57 = vmul.f32 %v2130_v36, %v118_v29  ;;  %v699_v15 = vmul.f32 %v2128_v7, %v118_v29  ;;  %v927_v54 = vmul.f32 %v2134_v60, %v118_v29 }
 0x627   :  { %800 = vrot.lane.b32.xlu1 %v2610_v32, %s2241_s27  ;;  %v475_v51 = vpop.xlane.xlu1 %474  ;;  %v706_v32 = vpop.xlane.xlu0 %705  ;;  %v262_v11 = vadd.f32 %v257_v3, %v250_v57 }
 0x628   :  { %v482_v18 = vadd.f32 %v475_v51, %v470_v21  ;;  %v711_v44 = vadd.f32 %v706_v32, %v699_v15  ;;  %v122_v21 = vld [vmem:[#allocation4 + $0x10] sm:$0xff] }
 0x62a   :  { %v1054_v5 = vsel %vm1038_vm13, %v261_v6, %v482_v18 }
 0x62b   :  { %v478_v27 = vpop.xlane.xlu1 %477 }
 0x62c   :  { %v483_v23 = vadd.f32 %v478_v27, %v471_v26  ;;  %v2783_v27 = vld [vmem:[#allocation4] sm:$0xff] }
 0x62e   :  { %v1055_v10 = vsel %vm1038_vm13, %v262_v11, %v483_v23 }
 0x62f   :  { %v260_v55 = vpop.xlane.xlu1 %259  ;;  %v1058_v45 = vsel %vm1042_vm14, %v1055_v10, %v711_v44 }
 0x630   :  { %v263_v58 = vadd.f32 %v260_v55, %v251_v16  ;;  %v121_v16 = vld [vmem:[#allocation4 + $0x8] sm:$0xff] }
 0x632   :  { %v1056_v7 = vsel %vm1038_vm13, %v263_v58, %v484_v17 }
 0x633   :  { %v703_v61 = vpop.xlane.xlu1 %702 }
 0x634   :  { %v710_v25 = vadd.f32 %v703_v61, %v698_v48 }
 0x636   :  { %v1057_v43 = vsel %vm1042_vm14, %v1054_v5, %v710_v25 }
 0x637   :  { %v709_v19 = vpop.xlane.xlu1 %708 }
 0x638   :  { %v712_v39 = vadd.f32 %v709_v19, %v700_v63 }
 0x63a   :  { %v1059_v37 = vsel %vm1042_vm14, %v1056_v7, %v712_v39 }
 0x63b   :  { %v267_v31 = vpop.permute.xlu1 %266 }
 0x63c   :  { %v279_v3 = vmul.f32 %v267_v31, %v2783_v27 }
 0x63e   :  { %v351_v48 = vadd.f32 %v2468_v14, %v279_v3 }
 0x63f   :  { %v2752_v22 = vpop.permute.xlu1 %487 }
 0x640   :  { %v500_v29 = vmul.f32 %v2752_v22, %v2783_v27 }
 0x643   :  { %v2754_v0 = vpop.permute.xlu1 %492 }
 0x648   :  { %v2756_v30 = vpop.permute.xlu1 %276 }
 0x649   :  { %v281_v35 = vmul.f32 %v2756_v30, %v122_v21 }
 0x64b   :  { %v353_v22 = vadd.f32 %v2466_v13, %v281_v35  ;;  %v1092_v13 = vld [vmem:[%s2951_s6] sm:$0xf] }
 0x64c   :  { %2033 = vmatprep.subr.msk.bf16.mxu1 %vm299_vm12, %v1092_v13 }
 0x64d   :  { %v498_v56 = vpop.permute.xlu1 %497 }
 0x64e   :  { %v502_v26 = vmul.f32 %v498_v56, %v122_v21 }
 0x67e   :  { %v931_v50 = vpop.xlane.xlu0 %930 }
 0x67f   :  { %v938_v24 = vadd.f32 %v931_v50, %v926_v28 }
 0x681   :  { %v1060_v33 = vsel %vm1046_vm15, %v1057_v43, %v938_v24 }
 0x682   :  { %1063 = vst.msk [vmem:[#allocation3] sm:$0xff] %vm50_vm11, %v1060_v33  ;;  %v934_v47 = vpop.xlane.xlu1 %933 }
 0x683   :  { %v939_v62 = vadd.f32 %v934_v47, %v927_v54  ;;  %v501_v47 = vmul.f32 %v2754_v0, %v121_v16 }
 0x685   :  { %v1061_v46 = vsel %vm1046_vm15, %v1058_v45, %v939_v62 }
 0x686   :  { %1064 = vst.msk [vmem:[#allocation3 + $0x8] sm:$0xff] %vm50_vm11, %v1061_v46  ;;  %v937_v42 = vpop.xlane.xlu0 %936  ;;  %v2771_v53 = vpop.permute.xlu1 %715  ;;  %v1093_v46 = vld [vmem:[%s2951_s6 + $0x4] sm:$0xf] }
 0x687   :  { %v940_v36 = vadd.f32 %v937_v42, %v928_v34  ;;  %v728_v44 = vmul.f32 %v2771_v53, %v2783_v27  ;;  %2032 = vmatprep.subr.msk.bf16.mxu0 %vm299_vm12, %v1093_v46 }
 0x689   :  { %v1062_v59 = vsel %vm1046_vm15, %v1059_v37, %v940_v36  ;;  %v1083_v61 = vld [vmem:[#allocation3] sm:$0xff] }
 0x68a   :  { %1065 = vst.msk [vmem:[#allocation3 + $0x10] sm:$0xff] %vm50_vm11, %v1062_v59  ;;  %v2777_v60 = vpop.permute.xlu1 %720  ;;  %v1086_v38 = vmax.f32 %v1083_v61, 1e-30 }
 0x68b   :  { %v729_v62 = vmul.f32 %v2777_v60, %v121_v16 }
 0x68d   :  { %v1084_v55 = vld [vmem:[#allocation3 + $0x8] sm:$0xff] }
 0x68e   :  { %v2779_v2 = vpop.permute.xlu1 %943  ;;  %v1087_v41 = vmax.f32 %v1084_v55, 1e-30  ;;  %v272_v28 = vpop.permute.xlu0 %271 }
 0x68f   :  { %v280_v8 = vmul.f32 %v272_v28, %v121_v16  ;;  %v956_v34 = vmul.f32 %v2779_v2, %v2783_v27 }
 0x691   :  { %v1085_v12 = vld [vmem:[#allocation3 + $0x10] sm:$0xff]  ;;  %v352_v36 = vadd.f32 %v2470_v20, %v280_v8 }
 0x692   :  { %v2781_v40 = vpop.permute.xlu1 %948  ;;  %v1088_v51 = vmax.f32 %v1085_v12, 1e-30  ;;  %v1154_v12 = vsel %vm299_vm12, %v1093_v46, 0 }
 0x693   :  { %v726_v9 = vpop.permute.xlu0 %725  ;;  %v957_v37 = vmul.f32 %v2781_v40, %v121_v16  ;;  %1969 = vmatpush3.bf16.msra.mxu0 %v1154_v12 }
 0x694   :  { %1128 = vperm.xlu0 %2066, %v1088_v51   ;;  %1270 = vperm.xlu1 %2067, %v1088_v51   ;;  %v730_v43 = vmul.f32 %v726_v9, %v122_v21 }
 0x696   :  { %v954_v19 = vpop.permute.xlu1 %953 }
 0x697   :  { %v573_v11 = vpop.permute.xlu0 %572  ;;  %v958_v54 = vmul.f32 %v954_v19, %v122_v21 }
 0x698   :  { %2071 = vset.pattern.permute.xlu0 %v2238_v1  ;;  %2068 = vset.pattern.permute.xlu1 %v2236_v49  ;;  %v580_v42 = vadd.f32 %v573_v11, %v501_v47 }
 0x699   :  { %1266 = vperm.xlu0 %2071, %v1087_v41   ;;  %1120 = vperm.xlu1 %2068, %v1086_v38  }
 0x69a   :  { %v571_v32 = vpop.permute.xlu1 %570 }
 0x69b   :  { %v579_v18 = vadd.f32 %v571_v32, %v500_v29 }
 0x69d   :  { %v2793_v31 = vsel %vm139_vm0, %v351_v48, %v579_v18  ;;  %2069 = vset.pattern.permute.xlu1 %v2238_v1  ;;  %2072 = vset.pattern.permute.xlu0 %v2239_v52 }
 0x69e   :  { %v575_v25 = vpop.permute.xlu1 %574  ;;  %1262 = vperm.xlu1 %2069, %v1086_v38  }
 0x69f   :  { %v581_v57 = vadd.f32 %v575_v25, %v502_v26 }
 0x6a1   :  { %v1068_v6 = vsel %vm139_vm0, %v353_v22, %v581_v57  ;;  %v1095_v57 = vld [vmem:[%s2951_s6 + $0xc] sm:$0xf] }
 0x6a2   :  { %2070 = vset.pattern.permute.xlu1 %v2236_v49  ;;  %v1211_v49 = vsel %vm299_vm12, %v1092_v13, 0  ;;  %v801_v56 = vpop.permute.xlu1 %800 }
 0x6a3   :  { %1124 = vperm.xlu1 %2070, %v1087_v41   ;;  %1975 = vmatpush3.bf16.msra.mxu1 %v1211_v49  ;;  %v808_v53 = vadd.f32 %v801_v56, %v729_v62  ;;  %v1380_v62 = vsel %vm299_vm12, %v1095_v57, 0 }
 0x6a4   :  { %2035 = vmatprep.subr.msk.bf16.mxu1 %vm299_vm12, %v1095_v57  ;;  %v1434_v57 = vld [vmem:[%s2948_s3 + $0x8] sm:$0xff] }
 0x6a7   :  { %2073 = vset.pattern.permute.xlu1 %v2239_v52 }
 0x6be   :  { %v1966_v14 = vpop.f32.mrf.mxu0 }
 0x6bf   :  { %1030 = vrot.lane.b32.xlu1 %v1966_v14, %s2242_s28 }
 0x6c0   :  { %v1009_v30 = vpop.f32.mrf.mxu0 }
 0x6c2   :  { %v1967_v23 = vpop.f32.mrf.mxu0 }
 0x6c3   :  { %1026 = vrot.lane.b32.xlu1 %v1009_v30, %s2242_s28 }
 0x6c4   :  { %v1012_v1 = vpop.f32.mrf.mxu0 }
 0x6c5   :  { %1028 = vrot.lane.b32.xlu0 %v1012_v1, %s2242_s28 }
 0x6c7   :  { %1352 = vperm.xlu1 %2073, %v1087_v41  }
 0x6c9   :  { %1348 = vperm.xlu0 %2072, %v1086_v38  }
 0x6cb   :  { %1356 = vperm.xlu1 %2073, %v1088_v51  }
 0x6cd   :  { %2074 = vset.pattern.permute.xlu0 %v2231_v4 }
 0x6ce   :  { %1098 = vperm.xlu0 %2074, %v1086_v38   ;;  %v1094_v38 = vld [vmem:[%s2951_s6 + $0x8] sm:$0xf] }
 0x6cf   :  { %2075 = vset.pattern.permute.xlu1 %v2231_v4  ;;  %v799_v4 = vpop.permute.xlu0 %798  ;;  %2034 = vmatprep.subr.msk.bf16.mxu0 %vm299_vm12, %v1094_v38 }
 0x6d0   :  { %1103 = vperm.xlu1 %2075, %v1087_v41   ;;  %v807_v39 = vadd.f32 %v799_v4, %v728_v44 }
 0x6d2   :  { %2076 = vset.pattern.permute.xlu0 %v2239_v52  ;;  %v1070_v60 = vsel %vm1069_vm2, %v2793_v31, %v807_v39 }
 0x6d3   :  { %v803_v15 = vpop.permute.xlu0 %802 }
 0x6d4   :  { %1108 = vperm.xlu1 %2075, %v1088_v51   ;;  %v809_v33 = vadd.f32 %v803_v15, %v730_v43  ;;  %v1067_v51 = vsel %vm139_vm0, %v352_v36, %v580_v42 }
 0x6d5   :  { %v1071_v61 = vsel %vm1069_vm2, %v1067_v51, %v808_v53 }
 0x6d6   :  { %v1072_v45 = vsel %vm1069_vm2, %v1068_v6, %v809_v33 }
 0x70f   :  { %v1271_v50 = vpop.permute.xlu1 %1270  ;;  %v1129_v52 = vpop.permute.xlu0 %1128 }
 0x710   :  { %2139 = vrcp.f32 %v1129_v52 }
 0x711   :  { %2141 = vrcp.f32 %v1271_v50 }
 0x714   :  { %v1121_v5 = vpop.permute.xlu1 %1120  ;;  %v1267_v17 = vpop.permute.xlu0 %1266 }
 0x715   :  { %2143 = vrcp.f32 %v1121_v5 }
 0x719   :  { %v1263_v24 = vpop.permute.xlu1 %1262 }
 0x71d   :  { %v2140_v40 = vpop.eup %2139 }
 0x71e   :  { %v1125_v10 = vpop.permute.xlu1 %1124  ;;  %v2142_v41 = vpop.eup %2141 }
 0x71f   :  { %2145 = vrcp.f32 %v1125_v10 }
 0x720   :  { %2147 = vrcp.f32 %v1267_v17 }
 0x721   :  { %2149 = vrcp.f32 %v1263_v24 }
 0x722   :  { %v2144_v48 = vpop.eup %2143 }
 0x72c   :  { %v2146_v35 = vpop.eup %2145 }
 0x72d   :  { %v2148_v6 = vpop.eup %2147 }
 0x72e   :  { %v2150_v1 = vpop.eup %2149 }
 0x731   :  { %v1031_v63 = vpop.permute.xlu1 %1030 }
 0x732   :  { %v1037_v58 = vadd.f32 %v1031_v63, %v958_v54 }
 0x734   :  { %v1075_v0 = vsel %vm203_vm8, %v1072_v45, %v1037_v58  ;;  %v1294_v45 = vsel %vm299_vm12, %v1094_v38, 0 }
 0x735   :  { %1079 = vst.msk [vmem:[#allocation4 + $0x10] sm:$0xff] %vm57_vm1, %v1075_v0  ;;  %v1027_v7 = vpop.permute.xlu1 %1026 }
 0x736   :  { %v1035_v59 = vadd.f32 %v1027_v7, %v956_v34 }
 0x737   :  { %v1029_v2 = vpop.permute.xlu0 %1028 }
 0x738   :  { %v1073_v27 = vsel %vm203_vm8, %v1070_v60, %v1035_v59  ;;  %v1036_v55 = vadd.f32 %v1029_v2, %v957_v37 }
 0x739   :  { %1077 = vst.msk [vmem:[#allocation4] sm:$0xff] %vm57_vm1, %v1073_v27 }
 0x73a   :  { %v1074_v20 = vsel %vm203_vm8, %v1071_v61, %v1036_v55 }
 0x73b   :  { %1078 = vst.msk [vmem:[#allocation4 + $0x8] sm:$0xff] %vm57_vm1, %v1074_v20 }
 0x73c   :  { %v1091_v19 = vld [vmem:[#allocation4 + $0x10] sm:$0xff] }
 0x73d   :  { %v1136_v3 = vmul.f32 %v2140_v40, %v1091_v19  ;;  %v1278_v29 = vmul.f32 %v2142_v41, %v1091_v19 }
 0x73f   :  { %v1138_v21 = vpack.c.bf16 %v1136_v3, %v1136_v3  ;;  %v1280_v31 = vpack.c.bf16 %v1278_v29, %v1278_v29  ;;  %v1435_v3 = vld [vmem:[%s2948_s3 + $0x10] sm:$0xff] }
 0x740   :  { %v1089_v32 = vld [vmem:[#allocation4] sm:$0xff] }
 0x741   :  { %1143 = vrot.lane.b32.xlu1 %v1138_v21, %s2234_s0  ;;  %v1132_v25 = vmul.f32 %v2144_v48, %v1089_v32  ;;  %v1274_v49 = vmul.f32 %v2150_v1, %v1089_v32 }
 0x742   :  { %v1353_v18 = vpop.permute.xlu1 %1352  ;;  %v1090_v26 = vld [vmem:[#allocation4 + $0x8] sm:$0xff] }
 0x743   :  { %2151 = vrcp.f32 %v1353_v18  ;;  %v1134_v22 = vmul.f32 %v2146_v35, %v1090_v26  ;;  %v1276_v23 = vmul.f32 %v2148_v6, %v1090_v26 }
 0x744   :  { %v1349_v14 = vpop.permute.xlu0 %1348 }
 0x745   :  { %2153 = vrcp.f32 %v1349_v14  ;;  %1285 = vrot.lane.b32.xlu1 %v1280_v31, %s2235_s25  ;;  %v1137_v30 = vpack.c.bf16 %v1134_v22, %v1132_v25  ;;  %v1279_v9 = vpack.c.bf16 %v1276_v23, %v1274_v49 }
 0x746   :  { %v1357_v13 = vpop.permute.xlu1 %1356 }
 0x747   :  { %2155 = vrcp.f32 %v1357_v13  ;;  %1141 = vrot.lane.b32.xlu0 %v1137_v30, %s2234_s0 }
 0x749   :  { %v1099_v28 = vpop.permute.xlu0 %1098 }
 0x74a   :  { %2157 = vrcp.f32 %v1099_v28 }
 0x74b   :  { %1283 = vrot.lane.b32.xlu0 %v1279_v9, %s2235_s25  ;;  %v1104_v56 = vpop.permute.xlu1 %1103  ;;  %v2083_v9 = vld [vmem:[%s2955_s10 + $0x8] sm:$0xff]  }
 0x74c   :  { %2159 = vrcp.f32 %v1104_v56  ;;  %v2084_v56 = vld [vmem:[%s2954_s9 + $0x8] sm:$0xff]  }
 0x74f   :  { %v1109_v50 = vpop.permute.xlu1 %1108 }
 0x750   :  { %v2152_v11 = vpop.eup %2151  ;;  %2161 = vrcp.f32 %v1109_v50  ;;  %v2085_v50 = vld [vmem:[%s2955_s10] sm:$0xff]  }
 0x751   :  { %v1362_v24 = vmul.f32 %v2152_v11, %v1090_v26  ;;  %v2086_v11 = vld [vmem:[%s2954_s9] sm:$0xff]  }
 0x752   :  { %v2154_v5 = vpop.eup %2153 }
 0x753   :  { %v1360_v4 = vmul.f32 %v2154_v5, %v1089_v32 }
 0x754   :  { %v2156_v15 = vpop.eup %2155 }
 0x755   :  { %v1365_v52 = vpack.c.bf16 %v1362_v24, %v1360_v4  ;;  %v1364_v43 = vmul.f32 %v2156_v15, %v1091_v19 }
 0x757   :  { %v2158_v10 = vpop.eup %2157  ;;  %1369 = vrot.lane.b32.xlu0 %v1365_v52, %s2237_s2  ;;  %v1366_v16 = vpack.c.bf16 %v1364_v43, %v1364_v43 }
 0x758   :  { %v1112_v54 = vmul.f32 %v2158_v10, %v1089_v32  ;;  %v1433_v32 = vld [vmem:[%s2948_s3] sm:$0xff] }
 0x759   :  { %v2160_v33 = vpop.eup %2159  ;;  %1371 = vrot.lane.b32.xlu1 %v1366_v16, %s2237_s2 }
 0x75a   :  { %v1114_v44 = vmul.f32 %v2160_v33, %v1090_v26 }
 0x75c   :  { %v1117_v63 = vpack.c.bf16 %v1114_v44, %v1112_v54 }
 0x75d   :  { %v2162_v47 = vpop.eup %2161 }
 0x75e   :  { %1976 = vmatprep.mubr.msk.bf16.mxu1 %vm139_vm0, %v1117_v63  ;;  %v1116_v8 = vmul.f32 %v2162_v47, %v1091_v19 }
 0x760   :  { %v1118_v58 = vpack.c.bf16 %v1116_v8, %v1116_v8  ;;  %v1827_v8 = vld [vmem:[%s2952_s7] ss:$0 sm:$0xff] }
 0x762   :  { %1977 = vmatmul.mubr.msk.bf16.vlgmr.msra.gmra.mxu1 %vm139_vm0, %v1118_v58 }
 0x763   :  { %1987 = vmatpush3.bf16.msra.mxu1 %v1380_v62 }
 0x764   :  { %2000 = vmatprep.subr.bf16.mxu1 %v2083_v9 }
 0x7b3   :  { %v1144_v17 = vpop.permute.xlu1 %1143 }
 0x7b7   :  { %v1286_v34 = vpop.permute.xlu1 %1285 }
 0x7b9   :  { %v1142_v39 = vpop.permute.xlu0 %1141 }
 0x7ba   :  { %1970 = vmatprep.mubr.msk.bf16.mxu0 %vm139_vm0, %v1142_v39 }
 0x7bb   :  { %1971 = vmatmul.mubr.msk.bf16.vlgmr.msra.gmra.mxu0 %vm139_vm0, %v1144_v17 }
 0x7bc   :  { %1981 = vmatpush3.bf16.msra.mxu0 %v1294_v45 }
 0x7bd   :  { %v1284_v46 = vpop.permute.xlu0 %1283  ;;  %1992 = vmatprep.subr.bf16.mxu0 %v2084_v56 }
 0x7be   :  { %1982 = vmatprep.mubr.msk.bf16.mxu0 %vm139_vm0, %v1284_v46 }
 0x7c3   :  { %1983 = vmatmul.mubr.msk.bf16.vlgmr.msra.gmra.mxu0 %vm139_vm0, %v1286_v34 }
 0x7c4   :  { %1993 = vmatpush3.bf16.msra.mxu0 %v2084_v56 }
 0x7c5   :  { %1994 = vmatprep.subr.bf16.mxu0 %v2086_v11 }
 0x7c8   :  { %1995 = vmatpush3.bf16.msra.mxu0 %v2086_v11 }
 0x7c9   :  { %v1370_v42 = vpop.permute.xlu0 %1369 }
 0x7ca   :  { %1988 = vmatprep.mubr.msk.bf16.mxu1 %vm139_vm0, %v1370_v42  ;;  %v2087_v42 = vld [vmem:[%s2956_s11 + $0x18] sm:$0xff]  }
 0x7cb   :  { %v1372_v0 = vpop.permute.xlu1 %1371  ;;  %2008 = vmatprep.subr.bf16.mxu0 %v2087_v42 }
 0x7cc   :  { %1989 = vmatmul.mubr.msk.bf16.vlgmr.msra.gmra.mxu1 %vm139_vm0, %v1372_v0  ;;  %v2088_v0 = vld [vmem:[%s2956_s11 + $0x10] sm:$0xff]   ;;  %vm1669_vm0 = vcmask 523264  }
 0x7cd   :  { %2001 = vmatpush3.bf16.msra.mxu1 %v2083_v9 }
 0x7ce   :  { %2002 = vmatprep.subr.bf16.mxu1 %v2085_v50 }
 0x7d1   :  { %2003 = vmatpush3.bf16.msra.mxu1 %v2085_v50 }
 0x822   :  { %v1978_v53 = vpop.f32.mrf.mxu1 }
 0x824   :  { %v1247_v7 = vpop.f32.mrf.mxu1 }
 0x826   :  { %v1979_v36 = vpop.f32.mrf.mxu1 }
 0x828   :  { %v1250_v61 = vpop.f32.mrf.mxu1 }
 0x87b   :  { %v1972_v37 = vpop.f32.mrf.mxu0 }
 0x87c   :  { %v1256_v55 = vadd.f32 %v1978_v53, %v1972_v37  ;;  %v2089_v53 = vld [vmem:[%s2956_s11 + $0x8] sm:$0xff]  }
 0x87d   :  { %v1190_v59 = vpop.f32.mrf.mxu0 }
 0x87e   :  { %v1248_v20 = vadd.f32 %v1247_v7, %v1190_v59  ;;  %v2090_v7 = vld [vmem:[%s2956_s11] sm:$0xff]   ;;  %s2243_s11 = smov [#allocation7]  }
 0x87f   :  { %v1973_v60 = vpop.f32.mrf.mxu0  ;;  %s1781_s17 = sshll.u32 %s2243_s11, 4  ;;  %s1782_s17 = int_to_ptr.vmem [resolvable:$true] %s1781_s17 }
 0x880   :  { %s2187_s18 = scalar_lea.vmem %s1782_s17, 384  ;;  %p2192_p1 = scmp.lt.s32.totalorder %s1782_s17, %s1782_s17 }
 0x881   :  { %v1193_v2 = vpop.f32.mrf.mxu0  ;;  %p2188_p0 = scmp.ne.s32.totalorder %s1782_s17, %s2187_s18  ;;  %p2193_p2 = scmp.lt.s32.totalorder %s2187_s18, %s2187_s18 }
 0x882   :  { %v1251_v48 = vadd.f32 %v1250_v61, %v1193_v2 }
 0x883   :  { %v1984_v12 = vpop.f32.mrf.mxu0  ;;  %p2194_p3 = por %p2193_p2, %p2192_p1 }
 0x884   :  { %v1346_v40 = vadd.f32 %v1984_v12, %v1256_v55 }
 0x885   :  { %v1330_v51 = vpop.f32.mrf.mxu0  ;;  %p2195_p4 = pnand %p2194_p3, %p2188_p0 }
 0x886   :  { %v1344_v41 = vadd.f32 %v1330_v51, %v1248_v20 }
 0x887   :  { %v1985_v27 = vpop.f32.mrf.mxu0 }
 0x889   :  { %v1333_v21 = vpop.f32.mrf.mxu0 }
 0x88a   :  { %v1345_v31 = vadd.f32 %v1333_v21, %v1251_v48 }
 0x88c   :  { %v1990_v19 = vpop.f32.mrf.mxu1 }
 0x88d   :  { %v1432_v38 = vadd.f32 %v1990_v19, %v1346_v40 }
 0x88e   :  { %v1416_v29 = vpop.f32.mrf.mxu1 }
 0x88f   :  { %v2863_v35 = vadd.f32 %v1435_v3, %v1432_v38  ;;  %v1430_v18 = vadd.f32 %v1416_v29, %v1344_v41 }
 0x890   :  { %v1991_v26 = vpop.f32.mrf.mxu1 }
 0x891   :  { %1763 = vst.msk [vmem:[#allocation7 + $0x10] sm:$0xff] %vm57_vm1, %v2863_v35  ;;  %v2867_v25 = vadd.f32 %v1433_v32, %v1430_v18  ;;  %v1441_v1 = vmul.f32 %v2863_v35, %v2863_v35 }
 0x892   :  { %v1419_v22 = vpop.f32.mrf.mxu1 }
 0x893   :  { %1761 = vst.msk [vmem:[#allocation7] sm:$0xff] %vm57_vm1, %v2867_v25  ;;  %v1431_v6 = vadd.f32 %v1419_v22, %v1345_v31  ;;  %v1439_v14 = vmul.f32 %v2867_v25, %v2867_v25  ;;  %v1449_v49 = vsel %vm57_vm1, %v1441_v1, 0.0 }
 0x895   :  { %v2876_v30 = vadd.f32 %v1434_v57, %v1431_v6  ;;  %v1443_v23 = vsel %vm57_vm1, %v1439_v14, 0.0 }
 0x896   :  { %1444 = vadd.xlane.f32.xlu0 %v1443_v23 }
 0x897   :  { %1762 = vst.msk [vmem:[#allocation7 + $0x8] sm:$0xff] %vm57_vm1, %v2876_v30  ;;  %v1440_v13 = vmul.f32 %v2876_v30, %v2876_v30 }
 0x899   :  { %v1446_v28 = vsel %vm57_vm1, %v1440_v13, 0.0 }
 0x89a   :  { %1450 = vadd.xlane.f32.xlu0 %v1449_v49  ;;  %1447 = vadd.xlane.f32.xlu1 %v1446_v28 }
 0x91f   :  { %v1445_v5 = vpop.xlane.xlu0 %1444 }
 0x920   :  { %v1453_v4 = vmul.f32 0.03125, %v1445_v5 }
 0x922   :  { %v1456_v24 = vadd.f32 1e-05, %v1453_v4 }
 0x923   :  { %v1451_v15 = vpop.xlane.xlu0 %1450  ;;  %v1448_v52 = vpop.xlane.xlu1 %1447 }
 0x924   :  { %v1455_v43 = vmul.f32 0.03125, %v1451_v15  ;;  %v1454_v10 = vmul.f32 0.03125, %v1448_v52  ;;  %2163 = vrsqrt.f32 %v1456_v24 }
 0x926   :  { %v1458_v16 = vadd.f32 1e-05, %v1455_v43  ;;  %v1457_v33 = vadd.f32 1e-05, %v1454_v10 }
 0x928   :  { %2165 = vrsqrt.f32 %v1458_v16 }
 0x929   :  { %2167 = vrsqrt.f32 %v1457_v33 }
 0x931   :  { %v2164_v54 = vpop.eup %2163 }
 0x932   :  { %v1462_v63 = vmul.f32 %v2164_v54, %v2867_v25 }
 0x934   :  { %v1472_v45 = vmul.f32 %v1827_v8, %v1462_v63 }
 0x935   :  { %v2166_v44 = vpop.eup %2165 }
 0x936   :  { %v2168_v47 = vpop.eup %2167  ;;  %v1464_v58 = vmul.f32 %v2166_v44, %v2863_v35 }
 0x937   :  { %v1463_v62 = vmul.f32 %v2168_v47, %v2876_v30 }
 0x938   :  { %v1474_v39 = vmul.f32 %v1827_v8, %v1464_v58 }
 0x939   :  { %v1473_v17 = vmul.f32 %v1827_v8, %v1463_v62 }
 0x93a   :  { %v1476_v46 = vpack.c.bf16 %v1474_v39, %v1474_v39 }
 0x93b   :  { %v1475_v34 = vpack.c.bf16 %v1473_v17, %v1472_v45 }
 0x93d   :  { %1996 = vmatprep.mubr.msk.bf16.mxu0 %vm57_vm1, %v1475_v34  ;;  %2004 = vmatprep.mubr.msk.bf16.mxu1 %vm57_vm1, %v1475_v34 }
 0x93e   :  { %1997 = vmatmul.mubr.msk.bf16.vlgmr.msra.gmra.mxu0 %vm57_vm1, %v1476_v46  ;;  %2005 = vmatmul.mubr.msk.bf16.vlgmr.msra.gmra.mxu1 %vm57_vm1, %v1476_v46 }
 0x93f   :  { %2009 = vmatpush3.bf16.msra.mxu0 %v2087_v42 }
 0x940   :  { %2010 = vmatprep.subr.bf16.mxu0 %v2088_v0 }
 0x943   :  { %2011 = vmatpush3.bf16.msra.mxu0 %v2088_v0 }
 0x944   :  { %2012 = vmatprep.subr.bf16.mxu0 %v2089_v53 }
 0x947   :  { %2013 = vmatpush3.bf16.msra.mxu0 %v2089_v53 }
 0x948   :  { %2014 = vmatprep.subr.bf16.mxu0 %v2090_v7 }
 0x94b   :  { %2015 = vmatpush3.bf16.msra.mxu0 %v2090_v7 }
 0x9fe   :  { %v1998_v36 = vpop.f32.mrf.mxu0  ;;  %v2006_v37 = vpop.f32.mrf.mxu1 }
 0x9ff   :  { %v1838_v59 = vmul.f32 -1.442695, %v2006_v37  ;;  %v1613_v48 = vmul.f32 %v2006_v37, %v1998_v36 }
 0xa00   :  { %v1533_v60 = vpop.f32.mrf.mxu0  ;;  %v1597_v2 = vpop.f32.mrf.mxu1 }
 0xa01   :  { %2169 = vpow2.f32 %v1838_v59  ;;  %v1836_v12 = vmul.f32 -1.442695, %v1597_v2  ;;  %v1611_v18 = vmul.f32 %v1597_v2, %v1533_v60 }
 0xa02   :  { %v1999_v51 = vpop.f32.mrf.mxu0  ;;  %v2007_v27 = vpop.f32.mrf.mxu1 }
 0xa03   :  { %2171 = vpow2.f32 %v1836_v12 }
 0xa04   :  { %v1600_v55 = vpop.f32.mrf.mxu1  ;;  %v1536_v21 = vpop.f32.mrf.mxu0 }
 0xa05   :  { %v1837_v61 = vmul.f32 -1.442695, %v1600_v55  ;;  %v1612_v26 = vmul.f32 %v1600_v55, %v1536_v21 }
 0xa07   :  { %2173 = vpow2.f32 %v1837_v61 }
 0xa0e   :  { %v2170_v20 = vpop.eup %2169 }
 0xa0f   :  { %v1625_v19 = vadd.f32 1.0, %v2170_v20 }
 0xa10   :  { %v2172_v40 = vpop.eup %2171 }
 0xa11   :  { %v1623_v3 = vadd.f32 1.0, %v2172_v40  ;;  %2175 = vrcp.f32 %v1625_v19 }
 0xa13   :  { %2177 = vrcp.f32 %v1623_v3 }
 0xa14   :  { %v2174_v41 = vpop.eup %2173 }
 0xa15   :  { %v1624_v38 = vadd.f32 1.0, %v2174_v41 }
 0xa17   :  { %2179 = vrcp.f32 %v1624_v38 }
 0xa1e   :  { %v2176_v29 = vpop.eup %2175 }
 0xa1f   :  { %v1634_v22 = vmul.f32 %v2176_v29, %v1613_v48 }
 0xa20   :  { %v2178_v32 = vpop.eup %2177 }
 0xa21   :  { %v1632_v57 = vmul.f32 %v2178_v32, %v1611_v18  ;;  %v1636_v23 = vpack.c.bf16 %v1634_v22, %v1634_v22 }
 0xa24   :  { %v2180_v31 = vpop.eup %2179 }
 0xa25   :  { %v1633_v6 = vmul.f32 %v2180_v31, %v1612_v26 }
 0xa27   :  { %v1635_v14 = vpack.c.bf16 %v1633_v6, %v1632_v57 }
 0xa29   :  { %2016 = vmatprep.mubr.msk.bf16.mxu0 %vm1669_vm0, %v1635_v14 }
 0xa2a   :  { %2017 = vmatmul.mubr.msk.bf16.vlgmr.msra.gmra.mxu0 %vm1669_vm0, %v1636_v23 }
 0xaea   :  { %v2018_v1 = vpop.f32.mrf.mxu0 }
 0xaeb   :  { %v1719_v49 = vadd.f32 %v2018_v1, %v2863_v35 }
 0xaec   :  { %v1710_v13 = vpop.f32.mrf.mxu0 }
 0xaed   :  { %v1711_v28 = vadd.f32 %v1710_v13, %v2867_v25  ;;  %v1726_v4 = vmul.f32 %v1719_v49, %v1719_v49 }
 0xaee   :  { %v2019_v9 = vpop.f32.mrf.mxu0 }
 0xaef   :  { %v1724_v56 = vmul.f32 %v1711_v28, %v1711_v28  ;;  %v1733_v52 = vsel %vm57_vm1, %v1726_v4, 0.0 }
 0xaf0   :  { %v1713_v50 = vpop.f32.mrf.mxu0 }
 0xaf1   :  { %v1714_v11 = vadd.f32 %v1713_v50, %v2876_v30  ;;  %v1727_v5 = vsel %vm57_vm1, %v1724_v56, 0.0 }
 0xaf2   :  { %1728 = vadd.xlane.f32.xlu0 %v1727_v5 }
 0xaf3   :  { %v1725_v24 = vmul.f32 %v1714_v11, %v1714_v11 }
 0xaf5   :  { %v1730_v15 = vsel %vm57_vm1, %v1725_v24, 0.0 }
 0xaf6   :  { %1731 = vadd.xlane.f32.xlu1 %v1730_v15  ;;  %1734 = vadd.xlane.f32.xlu0 %v1733_v52 }
 0xaf7   :  { %2198 = shalt.err (!%p2195_p4)
}
 0xaf8   :  { %s2244_s6 = smov 128   ;;  %v1845_v47 = vld [vmem:[%s2953_s8] ss:$0 sm:$0xff] }
 0xaf9   :  { %1787 = dma.vmem_to_hbm [thread:$0]  %s1782_s17, 384, %s2958_s13, [#allocation8], %s2244_s6, %s2244_s6, %s2240_s26  }
 0xafa   :  { %s2245_s13 = smov [#allocation5]  }
 0xafb   :  { %s1769_s0 = sshll.u32 %s2245_s13, 4  ;;  %s1770_s0 = int_to_ptr.vmem [resolvable:$true] %s1769_s0 }
 0xafc   :  { %s2207_s3 = scalar_lea.vmem %s1770_s0, 384  ;;  %p2212_p6 = scmp.lt.s32.totalorder %s1770_s0, %s1770_s0 }
 0xafd   :  { %p2208_p5 = scmp.ne.s32.totalorder %s1770_s0, %s2207_s3  ;;  %p2213_p7 = scmp.lt.s32.totalorder %s2207_s3, %s2207_s3 }
 0xaff   :  { %p2214_p8 = por %p2213_p7, %p2212_p6 }
 0xb01   :  { %p2215_p9 = pnand %p2214_p8, %p2208_p5 }
 0xb7b   :  { %v1729_v35 = vpop.xlane.xlu0 %1728 }
 0xb7c   :  { %v1736_v25 = vmul.f32 0.03125, %v1729_v35 }
 0xb7e   :  { %v1739_v30 = vadd.f32 1e-05, %v1736_v25 }
 0xb7f   :  { %v1732_v43 = vpop.xlane.xlu1 %1731  ;;  %v1735_v10 = vpop.xlane.xlu0 %1734 }
 0xb80   :  { %2181 = vrsqrt.f32 %v1739_v30  ;;  %v1737_v16 = vmul.f32 0.03125, %v1732_v43  ;;  %v1738_v33 = vmul.f32 0.03125, %v1735_v10 }
 0xb82   :  { %v1740_v54 = vadd.f32 1e-05, %v1737_v16  ;;  %v1741_v44 = vadd.f32 1e-05, %v1738_v33 }
 0xb84   :  { %2183 = vrsqrt.f32 %v1740_v54 }
 0xb85   :  { %2185 = vrsqrt.f32 %v1741_v44 }
 0xb8d   :  { %v2182_v63 = vpop.eup %2181 }
 0xb8e   :  { %v1745_v8 = vmul.f32 %v2182_v63, %v1711_v28 }
 0xb90   :  { %v1755_v58 = vmul.f32 %v1845_v47, %v1745_v8 }
 0xb91   :  { %v2184_v62 = vpop.eup %2183 }
 0xb92   :  { %v2186_v39 = vpop.eup %2185  ;;  %v1746_v45 = vmul.f32 %v2184_v62, %v1714_v11  ;;  %1758 = vst.msk [vmem:[#allocation5] sm:$0xff] %vm57_vm1, %v1755_v58 }
 0xb93   :  { %v1747_v17 = vmul.f32 %v2186_v39, %v1719_v49 }
 0xb94   :  { %v1756_v46 = vmul.f32 %v1845_v47, %v1746_v45 }
 0xb95   :  { %v1757_v34 = vmul.f32 %v1845_v47, %v1747_v17 }
 0xb96   :  { %1759 = vst.msk [vmem:[#allocation5 + $0x8] sm:$0xff] %vm57_vm1, %v1756_v46 }
 0xb97   :  { %1760 = vst.msk [vmem:[#allocation5 + $0x10] sm:$0xff] %vm57_vm1, %v1757_v34 }
 0xb98   :  { %2218 = shalt.err (!%p2215_p9)
}
 0xb99   :  { %1775 = dma.vmem_to_hbm [thread:$0]  %s1770_s0, 384, %s2957_s12, [#allocation6], %s2244_s6, %s2244_s6, %s2240_s26  }
 0xb9a   :  { %2227 = dma.done.wait [#allocation6], 384  }
 0xb9b   :  { %2228 = vsyncadd [#allocation6], 4294966912 }
 0xb9c   :  { %2229 = dma.done.wait [#allocation8], 384  }
 0xb9d   :  { %2230 = vsyncadd [#allocation8], 4294966912 }
 0xb9e   :  { %1794 = vsyncpa [#allocation6], 1 }
 0xb9f   :  { %1795 = vsyncpa [#allocation8], 1 }

</bundles_post_ra>
